<compile_context>
chip_gen: v6e
topology: v6e:2x2x1
jax: 0.10.0
libtpu: 0.0.40
codegen_flags: <defaults>
</compile_context>

<pallas_src>
import jax
import jax.numpy as jnp
from jax.experimental import pallas as pl
from jax.experimental.pallas import tpu as pltpu


def _round_up(x, m):
    return -(-x // m) * m


def _pool_dense_tanh_kernel(hid_ref, mask_ref, inv_ref, w_ref, b_ref, out_ref):
    """Fused masked mean pooling (MXU) -> dense(768->512) (MXU) -> tanh."""
    # (TB, 1, S) bf16  x  (TB, S, H) bf16  ->  (TB, 1, H), f32 accumulation on MXU.
    pooled = jnp.einsum("bqs,bsh->bqh", mask_ref[...], hid_ref[...],
                        preferred_element_type=jnp.float32)
    tb, _, h = pooled.shape
    emb = pooled.reshape(tb, h) * inv_ref[...]            # mean-pool rescale (f32)
    # dense (768 -> 512) on the MXU, bf16 operands with f32 accumulation.
    x = jnp.dot(emb.astype(jnp.bfloat16), w_ref[...],
                preferred_element_type=jnp.float32)        # (TB, O)
    out_ref[...] = jnp.tanh(x + b_ref[...])


def _vmem_budget_bytes():
    """Per-generation budget for the double-buffered working set."""
    try:
        kind = jax.devices()[0].device_kind.lower()
    except Exception:
        kind = ""
    if "v6" in kind:
        return 40 << 20          # 128 MiB physical VMEM: large tiles amortize step overhead
    if "v5p" in kind or "v4" in kind:
        return 32 << 20
    if "v5" in kind:
        return 24 << 20          # v5e: 128 MiB physical, but default scoped limit is 16 MiB
    return 20 << 20              # v7x / unknown: 64 MiB physical per TensorCore


def _head_vmem_bytes(tb, S, H, O):
    """Everything the pipeline keeps in VMEM (double-buffered blocks, padded)."""
    S_sub = _round_up(S, 16)                       # bf16 sublane packing
    S_lane = _round_up(S, 128)
    O_lane = _round_up(O, 128)
    hid = 2 * tb * S_sub * H * 2                   # bf16 hidden tile
    mask = 2 * tb * 16 * S_lane * 2                # bf16 (TB,1,S): per-row sublane pad
    inv = 2 * tb * 128 * 4                         # f32 (TB,1), lane padded
    w = 2 * H * O * 2                              # bf16 weight (constant block)
    bias = 2 * 16 * O_lane * 4                     # f32 (1,O), sublane padded
    out = 2 * tb * O_lane * 4                      # f32 output tile
    return hid + mask + inv + w + bias + out


def _pick_block_batch(B, S, H, O, vmem_budget, cap=256):
    """Largest multiple-of-8 batch tile whose full working set fits the budget."""
    fixed = _head_vmem_bytes(0, S, H, O)
    per_row = _head_vmem_bytes(1, S, H, O) - fixed
    rows = (vmem_budget - fixed) // max(per_row, 1)
    rows = max(8, min(int(rows), cap, _round_up(B, 8)))
    return max(8, (rows // 8) * 8)


def similarity_head(hidden_states, attention_mask, dense_w_t, dense_b, *, tb=None):
    """hidden_states: (B, S, H); attention_mask: (B, S) 0/1; returns (B, 512) f32."""
    B, S, H = hidden_states.shape
    O = dense_w_t.shape[1]

    # Exact mean-pool normalization: keep the 0/1 mask exact (bf16-safe) for the
    # MXU contraction; the clamp+divide becomes a tiny per-row f32 scale.
    mask_f = attention_mask.astype(jnp.float32)
    inv_denom = 1.0 / jnp.clip(jnp.sum(mask_f, axis=1, keepdims=True), 1e-9, None)
    mask_bf16 = attention_mask.astype(jnp.bfloat16).reshape(B, 1, S)   # S on lanes

    hid = hidden_states.astype(jnp.bfloat16)   # no-op: encoder already emits bf16
    w_bf16 = dense_w_t.astype(jnp.bfloat16)
    bias2d = dense_b.reshape(1, O).astype(jnp.float32)

    Bp = _round_up(B, 8)
    if tb is None:
        tb = _pick_block_batch(B, S, H, O, _vmem_budget_bytes())
        if Bp >= 16:
            # keep >= 2 grid steps: lets the "parallel" batch axis shard across
            # v7x's two TensorCores and keeps the BlockSpec pipeline active.
            tb = min(tb, _round_up((Bp + 1) // 2, 8))
    tb = min(tb, Bp)
    d = (tb // 8) * 8
    while d >= 8 and Bp % d:
        d -= 8                                   # prefer a tile that divides the batch
    tb = d if d >= 8 else tb
    Bp = _round_up(Bp, tb)

    if Bp != B:                                  # handle awkward batch sizes by padding
        pad = Bp - B
        hid = jnp.pad(hid, ((0, pad), (0, 0), (0, 0)))
        mask_bf16 = jnp.pad(mask_bf16, ((0, pad), (0, 0), (0, 0)))
        inv_denom = jnp.pad(inv_denom, ((0, pad), (0, 0)), constant_values=1.0)

    grid = (Bp // tb,)
    vmem_limit = int(min(max(_head_vmem_bytes(tb, S, H, O) * 5 // 4 + (4 << 20),
                             24 << 20), 48 << 20))

    out = pl.pallas_call(
        _pool_dense_tanh_kernel,
        out_shape=jax.ShapeDtypeStruct((Bp, O), jnp.float32),
        grid_spec=pltpu.PrefetchScalarGridSpec(
            num_scalar_prefetch=0,
            grid=grid,
            in_specs=[
                pl.BlockSpec((tb, S, H), lambda i: (i, 0, 0)),   # hidden tile (bf16)
                pl.BlockSpec((tb, 1, S), lambda i: (i, 0, 0)),   # 0/1 mask (bf16)
                pl.BlockSpec((tb, 1), lambda i: (i, 0)),         # 1/sum(mask) (f32)
                pl.BlockSpec((H, O), lambda i: (0, 0)),          # weight (VMEM resident)
                pl.BlockSpec((1, O), lambda i: (0, 0)),          # bias (VMEM resident)
            ],
            out_specs=pl.BlockSpec((tb, O), lambda i: (i, 0)),
        ),
        compiler_params=pltpu.CompilerParams(
            dimension_semantics=("parallel",),
            vmem_limit_bytes=vmem_limit),
        # NOTE: weight/bias have constant index_maps; on newer JAX they could be
        # single-buffered with pipeline_mode=pl.Buffered(1) to reclaim ~0.8 MiB.
    )(hid, mask_bf16, inv_denom, w_bf16, bias2d)
    return out[:B] if Bp != B else out


def encoder_stub(input_ids, embedding_table):
    # TODO(synk): full DistilBERT encoder (multi-head attention stack) is not
    # re-implemented; a deterministic embedding lookup stands in for
    # outputs.last_hidden_state.  It emits bf16 so the downcast fuses into the
    # gather instead of costing an extra HBM pass before the head kernel.
    return jnp.take(embedding_table, input_ids, axis=0).astype(jnp.bfloat16)


def similarity_specific_forward(input_ids, attention_mask, params):
    hidden_states = encoder_stub(input_ids, params["embedding_table"])
    return similarity_head(hidden_states, attention_mask,
                           params["dense_w_t"], params["dense_b"])


def _reference(input_ids, attention_mask, params):
    """Pure-JAX reference mirroring the kernel's numerics (same bf16 casts)."""
    hid = encoder_stub(input_ids, params["embedding_table"])            # bf16
    mask_bf16 = attention_mask.astype(jnp.bfloat16)
    pooled = jnp.einsum("bs,bsh->bh", mask_bf16, hid,
                        preferred_element_type=jnp.float32)
    denom = jnp.clip(jnp.sum(attention_mask.astype(jnp.float32), axis=1,
                             keepdims=True), 1e-9, None)
    emb = pooled / denom
    w = params["dense_w_t"].astype(jnp.bfloat16)
    x = jnp.dot(emb.astype(jnp.bfloat16), w,
                preferred_element_type=jnp.float32) + params["dense_b"]
    return jnp.tanh(x)


if __name__ == "__main__":
    B, S, H, O, VOCAB = 2, 8, 768, 512, 128

    key = jax.random.PRNGKey(0)
    k_emb, k_w, k_b, k_ids = jax.random.split(key, 4)

    # Deterministic synthetic parameters (shapes from the module __init__).
    params = {
        "embedding_table": jax.random.normal(k_emb, (VOCAB, H), jnp.float32) * 0.02,
        # nn.Linear(768, 512): weight (512, 768) -> stored transposed (768, 512)
        "dense_w_t": jax.random.normal(k_w, (H, O), jnp.float32) * 0.02,
        "dense_b": jax.random.normal(k_b, (O,), jnp.float32) * 0.02,
    }

    input_ids = jax.random.randint(k_ids, (B, S), 0, VOCAB, dtype=jnp.int32)
    # Attention mask with padding on the second example.
    attention_mask = jnp.array(
        [[1, 1, 1, 1, 1, 1, 1, 1],
         [1, 1, 1, 1, 1, 0, 0, 0]], dtype=jnp.int32)

    out = similarity_specific_forward(input_ids, attention_mask, params)
    out = jax.block_until_ready(out)

    ref = _reference(input_ids, attention_mask, params)
    assert out.shape == (B, O)
    # bf16 hidden/weight path (matched in the reference) -> modest tolerance for
    # MXU vs XLA accumulation-order differences.
    assert jnp.allclose(out, ref, atol=2e-3, rtol=2e-3), "mismatch vs reference"

    print("KERNEL_OK")
</pallas_src>

<mosaic_0001>
module attributes {stable_mosaic.version = 11 : i64} {
  func.func @_pool_dense_tanh_kernel(%arg0: i32, %arg1: memref<8x8x768xbf16, #tpu.memory_space<vmem>>, %arg2: memref<8x1x8xbf16, #tpu.memory_space<vmem>>, %arg3: memref<8x1xf32, #tpu.memory_space<vmem>>, %arg4: memref<768x512xbf16, #tpu.memory_space<vmem>>, %arg5: memref<1x512xf32, #tpu.memory_space<vmem>>, %arg6: memref<8x512xf32, #tpu.memory_space<vmem>>) attributes {dimension_semantics = [#tpu.dimension_semantics<parallel>], iteration_bounds = array<i64: 1>, scalar_prefetch = 0 : i64, scratch_operands = 0 : i64, tpu.core_type = #tpu.core_type<tc>, window_params = [{transform_indices = @transform_0, window_bounds = array<i64: 8, 8, 768>}, {transform_indices = @transform_1, window_bounds = array<i64: 8, 1, 8>}, {transform_indices = @transform_2, window_bounds = array<i64: 8, 1>}, {pipeline_mode = #tpu.pipeline_mode<synchronous>, transform_indices = @transform_3, window_bounds = array<i64: 768, 512>}, {pipeline_mode = #tpu.pipeline_mode<synchronous>, transform_indices = @transform_4, window_bounds = array<i64: 1, 512>}, {transform_indices = @transform_5, window_bounds = array<i64: 8, 512>}]} {
    %c0 = arith.constant 0 : index
    %c0_0 = arith.constant 0 : index
    %c0_1 = arith.constant 0 : index
    %0 = vector.load %arg2[%c0, %c0_0, %c0_1] : memref<8x1x8xbf16, #tpu.memory_space<vmem>>, vector<8x1x8xbf16>
    %c0_2 = arith.constant 0 : index
    %c0_3 = arith.constant 0 : index
    %c0_4 = arith.constant 0 : index
    %1 = vector.load %arg1[%c0_2, %c0_3, %c0_4] : memref<8x8x768xbf16, #tpu.memory_space<vmem>>, vector<8x8x768xbf16>
    "tpu.trace_start"() <{level = 10 : i32, message = "bqs,bsh->bqh"}> : () -> ()
    %cst = arith.constant dense<0.000000e+00> : vector<8x1x768xf32>
    %2 = tpu.matmul %0, %1, %cst {dimension_numbers = #tpu.dot_dimension_numbers<[2], [1], [1], [2], [0, 0, 0, 1, 1, 2], [0], [0]>} : vector<8x1x8xbf16>, vector<8x8x768xbf16>, vector<8x1x768xf32> -> vector<8x1x768xf32>
    "tpu.trace_stop"() : () -> ()
    %3 = vector.shape_cast %2 : vector<8x1x768xf32> to vector<8x768xf32>
    %c0_5 = arith.constant 0 : index
    %c0_6 = arith.constant 0 : index
    %4 = vector.load %arg3[%c0_5, %c0_6] : memref<8x1xf32, #tpu.memory_space<vmem>>, vector<8x1xf32>
    %5 = vector.broadcast %4 : vector<8x1xf32> to vector<8x768xf32>
    %6 = arith.mulf %3, %5 : vector<8x768xf32>
    %7 = arith.truncf %6 : vector<8x768xf32> to vector<8x768xbf16>
    %c0_7 = arith.constant 0 : index
    %c0_8 = arith.constant 0 : index
    %8 = vector.load %arg4[%c0_7, %c0_8] : memref<768x512xbf16, #tpu.memory_space<vmem>>, vector<768x512xbf16>
    %cst_9 = arith.constant dense<0.000000e+00> : vector<8x512xf32>
    %9 = tpu.matmul %7, %8, %cst_9 {dimension_numbers = #tpu.dot_dimension_numbers<[1], [0], [0], [1], [0, 0, 1, 1], [], []>} : vector<8x768xbf16>, vector<768x512xbf16>, vector<8x512xf32> -> vector<8x512xf32>
    %c0_10 = arith.constant 0 : index
    %c0_11 = arith.constant 0 : index
    %10 = vector.load %arg5[%c0_10, %c0_11] : memref<1x512xf32, #tpu.memory_space<vmem>>, vector<1x512xf32>
    %11 = vector.broadcast %10 : vector<1x512xf32> to vector<8x512xf32>
    %12 = arith.addf %9, %11 : vector<8x512xf32>
    %13 = math.tanh %12 : vector<8x512xf32>
    %c0_12 = arith.constant 0 : index
    %c0_13 = arith.constant 0 : index
    %14 = vector.load %arg6[%c0_12, %c0_13] : memref<8x512xf32, #tpu.memory_space<vmem>>, vector<8x512xf32>
    tpu.vector_store %arg6[%c0_12, %c0_13], %13 {strides = array<i32>} : memref<8x512xf32, #tpu.memory_space<vmem>>, vector<8x512xf32>,
    return
  }
  func.func @transform_0(%arg0: i32) -> (i32, i32, i32) {
    %c0_i32 = arith.constant 0 : i32
    %c0_i32_0 = arith.constant 0 : i32
    %c0_i32_1 = arith.constant 0 : i32
    return %arg0, %c0_i32, %c0_i32_0 : i32, i32, i32
  }
  func.func @transform_1(%arg0: i32) -> (i32, i32, i32) {
    %c0_i32 = arith.constant 0 : i32
    %c0_i32_0 = arith.constant 0 : i32
    %c0_i32_1 = arith.constant 0 : i32
    return %arg0, %c0_i32, %c0_i32_0 : i32, i32, i32
  }
  func.func @transform_2(%arg0: i32) -> (i32, i32) {
    %c0_i32 = arith.constant 0 : i32
    %c0_i32_0 = arith.constant 0 : i32
    return %arg0, %c0_i32 : i32, i32
  }
  func.func @transform_3(%arg0: i32) -> (i32, i32) {
    %c0_i32 = arith.constant 0 : i32
    %c0_i32_0 = arith.constant 0 : i32
    %c0_i32_1 = arith.constant 0 : i32
    return %c0_i32, %c0_i32_0 : i32, i32
  }
  func.func @transform_4(%arg0: i32) -> (i32, i32) {
    %c0_i32 = arith.constant 0 : i32
    %c0_i32_0 = arith.constant 0 : i32
    %c0_i32_1 = arith.constant 0 : i32
    return %c0_i32, %c0_i32_0 : i32, i32
  }
  func.func @transform_5(%arg0: i32) -> (i32, i32) {
    %c0_i32 = arith.constant 0 : i32
    %c0_i32_0 = arith.constant 0 : i32
    return %arg0, %c0_i32 : i32, i32
  }
}

</mosaic_0001>

<bundles_post_ra>
// kernel: tpu_custom_call.1
= control target key start
LH: loop header
LB: loop body
LE: loop exit
PB: predicated region body
PF: predicated region fallthrough
CT: control target
= control target key end

     0   :  { %10 = vsyncpa [#allocation3], 0  ;;  %s4158_s0 = inlined_call_operand.hbm [shape: bf16[8,8,768], index: 0, kind: input, shape index: {}]   ;;  %s4159_s1 = inlined_call_operand.vmem [shape: bf16[8,1,8], index: 1, kind: input, shape index: {}]   ;;  %s4160_s2 = inlined_call_operand.vmem [shape: f32[8,1], index: 2, kind: input, shape index: {}]   ;;  %s4161_s3 = inlined_call_operand.hbm [shape: bf16[768,512], index: 3, kind: input, shape index: {}]   ;;  %s4162_s4 = inlined_call_operand.vmem [shape: f32[1,512], index: 4, kind: input, shape index: {}]   ;;  %s4163_s5 = inlined_call_operand.hbm [shape: f32[8,512], index: 5, kind: output, shape index: {}]  }
   0x1   :  { %11 = vsyncpa [#allocation6], 0 }
   0x2   :  { %12 = vsyncpa [#allocation4], 0  ;;  %s3822_s18 = smov [#allocation2]  }
   0x3   :  { %s18_s19 = sshll.u32 %s3822_s18, 4  ;;  %s19_s19 = int_to_ptr.vmem [resolvable:$true] %s18_s19 }
   0x4   :  { %s3764_s20 = scalar_lea.vmem %s19_s19, 3072  ;;  %p3769_p1 = scmp.lt.s32.totalorder %s19_s19, %s19_s19 }
   0x5   :  { %p3765_p0 = scmp.ne.s32.totalorder %s19_s19, %s3764_s20  ;;  %p3770_p2 = scmp.lt.s32.totalorder %s3764_s20, %s3764_s20 }
   0x7   :  { %p3771_p3 = por %p3770_p2, %p3769_p1 }
   0x9   :  { %p3772_p4 = pnand %p3771_p3, %p3765_p0 }
   0xb   :  { %3775 = shalt.err (!%p3772_p4)
}
   0xc   :  { %s3823_s21 = smov 384   ;;  %s3824_s22 = smov 24  }
   0xd   :  { %24 = dma.hbm_to_vmem [thread:$0]  %s4158_s0, 3072, %s19_s19, [#allocation3], %s3823_s21, %s3823_s21, %s3824_s22  }
   0xe   :  { %s3825_s25 = smov [#allocation5]  }
   0xf   :  { %s34_s26 = sshll.u32 %s3825_s25, 4  ;;  %s35_s26 = int_to_ptr.vmem [resolvable:$true] %s34_s26 }
  0x10   :  { %s3784_s27 = scalar_lea.vmem %s35_s26, 24576  ;;  %p3789_p6 = scmp.lt.s32.totalorder %s35_s26, %s35_s26 }
  0x11   :  { %p3785_p5 = scmp.ne.s32.totalorder %s35_s26, %s3784_s27  ;;  %p3790_p7 = scmp.lt.s32.totalorder %s3784_s27, %s3784_s27 }
  0x13   :  { %p3791_p8 = por %p3790_p7, %p3789_p6 }
  0x15   :  { %p3792_p9 = pnand %p3791_p8, %p3785_p5 }
  0x17   :  { %3795 = shalt.err (!%p3792_p9)
}
  0x18   :  { %s3826_s28 = smov 256   ;;  %s3827_s29 = smov 16  }
  0x19   :  { %40 = dma.hbm_to_vmem [thread:$0]  %s4161_s3, 24576, %s35_s26, [#allocation6], %s3826_s28, %s3826_s28, %s3827_s29  }
  0x1a   :  { %3816 = dma.done.wait [#allocation3], 3072  }
  0x1b   :  { %3817 = vsyncadd [#allocation3], 4294964224 }
  0x1c   :  { %3818 = dma.done.wait [#allocation6], 24576  }
  0x1d   :  { %3819 = vsyncadd [#allocation6], 4294942720  ;;  %v3828_v0 = vmov 0   ;;  %v58_v1 = vld [vmem:[#allocation2] sm:$0xff]  ;;  %vm101_vm0 = vcmask 1043456   ;;  %v59_v2 = vld [vmem:[#allocation2 + $0x8] sm:$0xff] }
  0x1e   :  { %152 = vmatprep.mubr.bf16.mxu0 %v3828_v0  ;;  %193 = vmatprep.mubr.bf16.mxu1 %v3828_v0  ;;  %v3116_v3 = vcombine.high %v58_v1, %v58_v1  ;;  %v3118_v4 = vcombine.high %v59_v2, %v59_v2  ;;  %v3115_v5 = vcombine.low %v58_v1, %v58_v1  ;;  %v60_v7 = vld [vmem:[#allocation2 + $0x10] sm:$0xff]  ;;  %v61_v8 = vld [vmem:[#allocation2 + $0x18] sm:$0xff]  ;;  %v62_v15 = vld [vmem:[#allocation2 + $0x20] sm:$0xff]  ;;  %vm97_vm1 = vcmask 64512  }
  0x1f   :  { %3411 = vset.pattern.permute.xlu0 %v3828_v0  ;;  %v3117_v6 = vcombine.low %v59_v2, %v59_v2  ;;  %v3120_v9 = vcombine.high %v60_v7, %v60_v7  ;;  %v3119_v10 = vcombine.low %v60_v7, %v60_v7  ;;  %v3128_v11 = vcombine.high %v61_v8, %v61_v8  ;;  %v63_v16 = vld [vmem:[#allocation2 + $0x28] sm:$0xff]  ;;  %v50_v17 = vld [vmem:[%s4159_s1] sm:$0x1]  ;;  %v51_v25 = vld [vmem:[%s4159_s1 + $0x1] sm:$0x1] }
  0x20   :  { %v3127_v12 = vcombine.low %v61_v8, %v61_v8  ;;  %3121 = vmatprep.subr.msk.bf16.mxu0 %vm101_vm0, %v3116_v3  ;;  %3123 = vmatprep.subr.msk.bf16.mxu1 %vm101_vm0, %v3118_v4  ;;  %v103_v13 = vsel %vm101_vm0, %v3115_v5, 0  ;;  %v3130_v20 = vcombine.high %v62_v15, %v62_v15  ;;  %v3132_v21 = vcombine.high %v63_v16, %v63_v16  ;;  %v1356_v22 = vld [vmem:[%s4160_s2] sm:$0xff]  ;;  %v64_v26 = vld [vmem:[#allocation2 + $0x30] sm:$0xff]  ;;  %v65_v27 = vld [vmem:[#allocation2 + $0x38] sm:$0xff] }
  0x21   :  { %v109_v14 = vsel %vm101_vm0, %v3117_v6, 0  ;;  %135 = vmatpush1.bf16.msra.mxu0 %v103_v13  ;;  %v115_v18 = vsel %vm101_vm0, %v3119_v10, 0  ;;  %v3129_v23 = vcombine.low %v62_v15, %v62_v15  ;;  %v3131_v24 = vcombine.low %v63_v16, %v63_v16  ;;  %1359 = vperm.xlu0 %3411, %v1356_v22   ;;  %v66_v34 = vld [vmem:[#allocation2 + $0x40] sm:$0xff]  ;;  %v67_v35 = vld [vmem:[#allocation2 + $0x48] sm:$0xff]  ;;  %v68_v42 = vld [vmem:[#allocation2 + $0x50] sm:$0xff] }
  0x22   :  { %176 = vmatpush1.bf16.msra.mxu1 %v109_v14  ;;  %3125 = vmatprep.subr.msk.bf16.mxu0 %vm101_vm0, %v3120_v9  ;;  %v262_v19 = vsel %vm101_vm0, %v3127_v12, 0  ;;  %v3140_v30 = vcombine.high %v64_v26, %v64_v26  ;;  %v3142_v31 = vcombine.high %v65_v27, %v65_v27  ;;  %v3139_v32 = vcombine.low %v64_v26, %v64_v26  ;;  %v69_v43 = vld [vmem:[#allocation2 + $0x58] sm:$0xff]  ;;  %v52_v44 = vld [vmem:[%s4159_s1 + $0x2] sm:$0x1]  ;;  %v71_v52 = vld [vmem:[#allocation2 + $0x68] sm:$0xff] }
  0x23   :  { %3133 = vmatprep.subr.msk.bf16.mxu1 %vm101_vm0, %v3128_v11  ;;  %v268_v28 = vsel %vm101_vm0, %v3129_v23, 0  ;;  %v274_v29 = vsel %vm101_vm0, %v3131_v24, 0  ;;  %v3141_v33 = vcombine.low %v65_v27, %v65_v27  ;;  %v3144_v38 = vcombine.high %v66_v34, %v66_v34  ;;  %v70_v51 = vld [vmem:[#allocation2 + $0x60] sm:$0xff]  ;;  %v72_v60 = vld [vmem:[#allocation2 + $0x70] sm:$0xff]  ;;  %v73_v61 = vld [vmem:[#allocation2 + $0x78] sm:$0xff] }
  0x24   :  { %3122 = vmatmul.mubr.msk.bf16.vlgmr.msra.gmra.mxu0 %vm97_vm1, %v50_v17  ;;  %v421_v36 = vsel %vm101_vm0, %v3139_v32, 0  ;;  %v3152_v39 = vcombine.high %v67_v35, %v67_v35  ;;  %v3143_v40 = vcombine.low %v66_v34, %v66_v34  ;;  %v3151_v41 = vcombine.low %v67_v35, %v67_v35  ;;  %v53_v53 = vld [vmem:[%s4159_s1 + $0x3] sm:$0x1]  ;;  %v75_v6 = vld [vmem:[#allocation2 + $0x88] sm:$0xff]  ;;  %v54_v7 = vld [vmem:[%s4159_s1 + $0x4] sm:$0x1] }
  0x25   :  { %3124 = vmatmul.mubr.msk.bf16.vlgmr.msra.gmra.mxu1 %vm97_vm1, %v50_v17  ;;  %217 = vmatpush1.bf16.msra.mxu0 %v115_v18  ;;  %v427_v37 = vsel %vm101_vm0, %v3141_v33, 0  ;;  %v3154_v47 = vcombine.high %v68_v42, %v68_v42  ;;  %v3156_v48 = vcombine.high %v69_v43, %v69_v43  ;;  %v3153_v49 = vcombine.low %v68_v42, %v68_v42  ;;  %v74_v5 = vld [vmem:[#allocation2 + $0x80] sm:$0xff]  ;;  %v76_v14 = vld [vmem:[#allocation2 + $0x90] sm:$0xff]  ;;  %v77_v15 = vld [vmem:[#allocation2 + $0x98] sm:$0xff] }
  0x26   :  { %294 = vmatpush1.bf16.msra.mxu1 %v262_v19  ;;  %234 = vmatprep.mubr.bf16.mxu0 %v3828_v0  ;;  %v433_v45 = vsel %vm101_vm0, %v3143_v40, 0  ;;  %v580_v46 = vsel %vm101_vm0, %v3151_v41, 0  ;;  %v3155_v50 = vcombine.low %v69_v43, %v69_v43  ;;  %v3164_v56 = vcombine.high %v70_v51, %v70_v51  ;;  %v55_v16 = vld [vmem:[%s4159_s1 + $0x5] sm:$0x1]  ;;  %v79_v24 = vld [vmem:[#allocation2 + $0xa8] sm:$0xff]  ;;  %v81_v32 = vld [vmem:[#allocation2 + $0xb8] sm:$0xff] }
  0x27   :  { %311 = vmatprep.mubr.bf16.mxu1 %v3828_v0  ;;  %3135 = vmatprep.subr.msk.bf16.mxu0 %vm101_vm0, %v3130_v20  ;;  %v586_v54 = vsel %vm101_vm0, %v3153_v49, 0  ;;  %v3166_v57 = vcombine.high %v71_v52, %v71_v52  ;;  %v3163_v58 = vcombine.low %v70_v51, %v70_v51  ;;  %v3165_v59 = vcombine.low %v71_v52, %v71_v52  ;;  %v78_v23 = vld [vmem:[#allocation2 + $0xa0] sm:$0xff] }
  0x28   :  { %3137 = vmatprep.subr.msk.bf16.mxu1 %vm101_vm0, %v3132_v21  ;;  %v592_v55 = vsel %vm101_vm0, %v3155_v50, 0  ;;  %v3168_v1 = vcombine.high %v72_v60, %v72_v60  ;;  %v3176_v2 = vcombine.high %v73_v61, %v73_v61  ;;  %v3167_v3 = vcombine.low %v72_v60, %v72_v60  ;;  %v56_v33 = vld [vmem:[%s4159_s1 + $0x6] sm:$0x1]  ;;  %v57_v40 = vld [vmem:[%s4159_s1 + $0x7] sm:$0x1] }
  0x29   :  { %v739_v62 = vsel %vm101_vm0, %v3163_v58, 0  ;;  %v745_v63 = vsel %vm101_vm0, %v3165_v59, 0  ;;  %v3175_v4 = vcombine.low %v73_v61, %v73_v61  ;;  %v3178_v10 = vcombine.high %v74_v5, %v74_v5  ;;  %v3462_v43 = vld [vmem:[#allocation5 + $0xe4] ss:$16 sps:$4 sm:$0xff]   ;;  %v3466_v49 = vld [vmem:[#allocation5 + $0xa0] ss:$16 sps:$4 sm:$0xff]  }
  0x2a   :  { %v751_v8 = vsel %vm101_vm0, %v3167_v3, 0  ;;  %v3180_v11 = vcombine.high %v75_v6, %v75_v6  ;;  %v3177_v12 = vcombine.low %v74_v5, %v74_v5  ;;  %v3179_v13 = vcombine.low %v75_v6, %v75_v6  ;;  %v3469_v50 = vld [vmem:[#allocation5 + $0x2e0] ss:$16 sps:$4 sm:$0xff]   ;;  %v3477_v51 = vld [vmem:[#allocation5 + $0x2c4] ss:$16 sps:$4 sm:$0xff]  }
  0x2b   :  { %v898_v9 = vsel %vm101_vm0, %v3175_v4, 0  ;;  %v3188_v19 = vcombine.high %v76_v14, %v76_v14  ;;  %v3190_v20 = vcombine.high %v77_v15, %v77_v15  ;;  %v3187_v21 = vcombine.low %v76_v14, %v76_v14  ;;  %v3472_v52 = vld [vmem:[#allocation5 + $0x80] ss:$16 sps:$4 sm:$0xff]   ;;  %v3486_v58 = vld [vmem:[#allocation5 + $0x44] ss:$16 sps:$4 sm:$0xff]  }
  0x2c   :  { %3126 = vmatmul.mubr.msk.bf16.vlgmr.msra.gmra.mxu0 %vm97_vm1, %v50_v17  ;;  %v904_v17 = vsel %vm101_vm0, %v3177_v12, 0  ;;  %v910_v18 = vsel %vm101_vm0, %v3179_v13, 0  ;;  %v3189_v22 = vcombine.low %v77_v15, %v77_v15  ;;  %v3192_v27 = vcombine.high %v78_v23, %v78_v23  ;;  %v3489_v59 = vld [vmem:[#allocation5 + $0x284] ss:$16 sps:$4 sm:$0xff]   ;;  %v3484_v60 = vld [vmem:[#allocation5 + $0x40] ss:$16 sps:$4 sm:$0xff]  }
  0x2d   :  { %3134 = vmatmul.mubr.msk.bf16.vlgmr.msra.gmra.mxu1 %vm97_vm1, %v51_v25  ;;  %335 = vmatpush1.bf16.msra.mxu0 %v268_v28  ;;  %v3200_v28 = vcombine.high %v79_v24, %v79_v24  ;;  %v3487_v61 = vld [vmem:[#allocation5 + $0x280] ss:$16 sps:$4 sm:$0xff]   ;;  %v3498_v3 = vld [vmem:[#allocation5 + $0x4] ss:$16 sps:$4 sm:$0xff]   ;;  %vm1783_vm2 = vcmask 1041409   ;;  %vm1786_vm3 = vcmask 1042434  }
  0x2e   :  { %376 = vmatpush1.bf16.msra.mxu1 %v274_v29  ;;  %352 = vmatprep.mubr.bf16.mxu0 %v3828_v0  ;;  %v1063_v26 = vsel %vm101_vm0, %v3189_v22, 0  ;;  %v3191_v29 = vcombine.low %v78_v23, %v78_v23  ;;  %v3501_v4 = vld [vmem:[#allocation5 + $0x244] ss:$16 sps:$4 sm:$0xff]   ;;  %v3496_v5 = vld [vmem:[#allocation5] ss:$16 sps:$4 sm:$0xff]   ;;  %vm1789_vm4 = vcmask 1043459  }
  0x2f   :  { %393 = vmatprep.mubr.bf16.mxu1 %v3828_v0  ;;  %3145 = vmatprep.subr.msk.bf16.mxu0 %vm101_vm0, %v3140_v30  ;;  %v3199_v30 = vcombine.low %v79_v24, %v79_v24  ;;  %v3499_v6 = vld [vmem:[#allocation5 + $0x240] ss:$16 sps:$4 sm:$0xff]   ;;  %v3513_v12 = vld [vmem:[#allocation5 + $0x204] ss:$16 sps:$4 sm:$0xff]   ;;  %vm1792_vm5 = vcmask 1044484   ;;  %vm1795_vm6 = vcmask 1045509  }
  0x30   :  { %3147 = vmatprep.subr.msk.bf16.mxu1 %vm101_vm0, %v3142_v31  ;;  %v80_v31 = vld [vmem:[#allocation2 + $0xb0] sm:$0xff]  ;;  %v1069_v34 = vsel %vm101_vm0, %v3191_v29, 0  ;;  %vm1798_vm7 = vcmask 1046534   ;;  %vm1801_vm8 = vcmask 1047559  }
  0x31   :  { %v1216_v35 = vsel %vm101_vm0, %v3199_v30, 0  ;;  %v3508_v13 = vld [vmem:[#allocation5 + $0x1c0] ss:$16 sps:$4 sm:$0xff]   ;;  %v3516_v15 = vld [vmem:[#allocation5 + $0x1a4] ss:$16 sps:$4 sm:$0xff]  }
  0x32   :  { %v3511_v14 = vld [vmem:[#allocation5 + $0x200] ss:$16 sps:$4 sm:$0xff]   ;;  %v3528_v23 = vld [vmem:[#allocation5 + $0x164] ss:$16 sps:$4 sm:$0xff]  }
  0x33   :  { %v3523_v22 = vld [vmem:[#allocation5 + $0x3c0] ss:$16 sps:$4 sm:$0xff]   ;;  %v3531_v24 = vld [vmem:[#allocation5 + $0x3a4] ss:$16 sps:$4 sm:$0xff]  }
  0x34   :  { %3136 = vmatmul.mubr.msk.bf16.vlgmr.msra.gmra.mxu0 %vm97_vm1, %v51_v25  ;;  %v3532_v29 = vld [vmem:[#allocation5 + $0x140] ss:$16 sps:$4 sm:$0xff]  }
  0x35   :  { %3138 = vmatmul.mubr.msk.bf16.vlgmr.msra.gmra.mxu1 %vm97_vm1, %v51_v25  ;;  %453 = vmatpush1.bf16.msra.mxu0 %v421_v36  ;;  %v1057_v25 = vsel %vm101_vm0, %v3187_v21, 0  ;;  %v3202_v36 = vcombine.high %v80_v31, %v80_v31  ;;  %v3520_v21 = vld [vmem:[#allocation5 + $0x180] ss:$16 sps:$4 sm:$0xff]  }
  0x36   :  { %494 = vmatpush1.bf16.msra.mxu1 %v427_v37  ;;  %470 = vmatprep.mubr.bf16.mxu0 %v3828_v0  ;;  %v3204_v37 = vcombine.high %v81_v32, %v81_v32  ;;  %v3535_v30 = vld [vmem:[#allocation5 + $0x380] ss:$16 sps:$4 sm:$0xff]  }
  0x37   :  { %511 = vmatprep.mubr.bf16.mxu1 %v3828_v0  ;;  %3149 = vmatprep.subr.msk.bf16.mxu0 %vm101_vm0, %v3144_v38  ;;  %v3201_v38 = vcombine.low %v80_v31, %v80_v31  ;;  %v3540_v31 = vld [vmem:[#allocation5 + $0x124] ss:$16 sps:$4 sm:$0xff]  }
  0x38   :  { %3157 = vmatprep.subr.msk.bf16.mxu1 %vm101_vm0, %v3152_v39  ;;  %v3203_v39 = vcombine.low %v81_v32, %v81_v32  ;;  %v3543_v32 = vld [vmem:[#allocation5 + $0x364] ss:$16 sps:$4 sm:$0xff]  }
  0x39   :  { %v1222_v41 = vsel %vm101_vm0, %v3201_v38, 0  ;;  %v3547_v38 = vld [vmem:[#allocation5 + $0x340] ss:$16 sps:$4 sm:$0xff]  }
  0x3a   :  { %v1228_v42 = vsel %vm101_vm0, %v3203_v39, 0  ;;  %v3552_v39 = vld [vmem:[#allocation5 + $0x324] ss:$16 sps:$4 sm:$0xff]  }
  0x3c   :  { %3146 = vmatmul.mubr.msk.bf16.vlgmr.msra.gmra.mxu0 %vm97_vm1, %v52_v44 }
  0x3d   :  { %3148 = vmatmul.mubr.msk.bf16.vlgmr.msra.gmra.mxu1 %vm97_vm1, %v52_v44  ;;  %535 = vmatpush1.bf16.msra.mxu0 %v433_v45  ;;  %v3465_v45 = vld [vmem:[#allocation5 + $0xc4] ss:$16 sps:$4 sm:$0xff]  }
  0x3e   :  { %612 = vmatpush1.bf16.msra.mxu1 %v580_v46  ;;  %552 = vmatprep.mubr.bf16.mxu0 %v3828_v0  ;;  %v3463_v46 = vld [vmem:[#allocation5 + $0xc0] ss:$16 sps:$4 sm:$0xff]  }
  0x3f   :  { %629 = vmatprep.mubr.bf16.mxu1 %v3828_v0  ;;  %3159 = vmatprep.subr.msk.bf16.mxu0 %vm101_vm0, %v3154_v47  ;;  %v3468_v47 = vld [vmem:[#allocation5 + $0xa4] ss:$16 sps:$4 sm:$0xff]  }
  0x40   :  { %3161 = vmatprep.subr.msk.bf16.mxu1 %vm101_vm0, %v3156_v48  ;;  %v3471_v48 = vld [vmem:[#allocation5 + $0x2e4] ss:$16 sps:$4 sm:$0xff]  }
  0x44   :  { %3150 = vmatmul.mubr.msk.bf16.vlgmr.msra.gmra.mxu0 %vm97_vm1, %v52_v44  ;;  %v3460_v44 = vld [vmem:[#allocation5 + $0xe0] ss:$16 sps:$4 sm:$0xff]  }
  0x45   :  { %3158 = vmatmul.mubr.msk.bf16.vlgmr.msra.gmra.mxu1 %vm97_vm1, %v53_v53  ;;  %653 = vmatpush1.bf16.msra.mxu0 %v586_v54  ;;  %v3480_v54 = vld [vmem:[#allocation5 + $0x64] ss:$16 sps:$4 sm:$0xff]  }
  0x46   :  { %694 = vmatpush1.bf16.msra.mxu1 %v592_v55  ;;  %670 = vmatprep.mubr.bf16.mxu0 %v3828_v0  ;;  %v3483_v55 = vld [vmem:[#allocation5 + $0x2a4] ss:$16 sps:$4 sm:$0xff]  }
  0x47   :  { %711 = vmatprep.mubr.bf16.mxu1 %v3828_v0  ;;  %3169 = vmatprep.subr.msk.bf16.mxu0 %vm101_vm0, %v3164_v56  ;;  %v3478_v56 = vld [vmem:[#allocation5 + $0x60] ss:$16 sps:$4 sm:$0xff]  }
  0x48   :  { %3171 = vmatprep.subr.msk.bf16.mxu1 %vm101_vm0, %v3166_v57  ;;  %v3481_v57 = vld [vmem:[#allocation5 + $0x2a0] ss:$16 sps:$4 sm:$0xff]  }
  0x4c   :  { %3160 = vmatmul.mubr.msk.bf16.vlgmr.msra.gmra.mxu0 %vm97_vm1, %v53_v53 }
  0x4d   :  { %3162 = vmatmul.mubr.msk.bf16.vlgmr.msra.gmra.mxu1 %vm97_vm1, %v53_v53  ;;  %771 = vmatpush1.bf16.msra.mxu0 %v739_v62  ;;  %v3475_v53 = vld [vmem:[#allocation5 + $0x2c0] ss:$16 sps:$4 sm:$0xff]   ;;  %v3492_v62 = vld [vmem:[#allocation5 + $0x24] ss:$16 sps:$4 sm:$0xff]  }
  0x4e   :  { %812 = vmatpush1.bf16.msra.mxu1 %v745_v63  ;;  %788 = vmatprep.mubr.bf16.mxu0 %v3828_v0  ;;  %v3495_v63 = vld [vmem:[#allocation5 + $0x264] ss:$16 sps:$4 sm:$0xff]  }
  0x4f   :  { %829 = vmatprep.mubr.bf16.mxu1 %v3828_v0  ;;  %3173 = vmatprep.subr.msk.bf16.mxu0 %vm101_vm0, %v3168_v1  ;;  %v3490_v1 = vld [vmem:[#allocation5 + $0x20] ss:$16 sps:$4 sm:$0xff]  }
  0x50   :  { %3181 = vmatprep.subr.msk.bf16.mxu1 %vm101_vm0, %v3176_v2  ;;  %v3493_v2 = vld [vmem:[#allocation5 + $0x260] ss:$16 sps:$4 sm:$0xff]  }
  0x54   :  { %3170 = vmatmul.mubr.msk.bf16.vlgmr.msra.gmra.mxu0 %vm97_vm1, %v54_v7 }
  0x55   :  { %3172 = vmatmul.mubr.msk.bf16.vlgmr.msra.gmra.mxu1 %vm97_vm1, %v54_v7  ;;  %853 = vmatpush1.bf16.msra.mxu0 %v751_v8  ;;  %v3507_v8 = vld [vmem:[#allocation5 + $0x224] ss:$16 sps:$4 sm:$0xff]  }
  0x56   :  { %930 = vmatpush1.bf16.msra.mxu1 %v898_v9  ;;  %870 = vmatprep.mubr.bf16.mxu0 %v3828_v0  ;;  %v3502_v9 = vld [vmem:[#allocation5 + $0x1e0] ss:$16 sps:$4 sm:$0xff]  }
  0x57   :  { %947 = vmatprep.mubr.bf16.mxu1 %v3828_v0  ;;  %3183 = vmatprep.subr.msk.bf16.mxu0 %vm101_vm0, %v3178_v10  ;;  %v3505_v10 = vld [vmem:[#allocation5 + $0x220] ss:$16 sps:$4 sm:$0xff]  }
  0x58   :  { %3185 = vmatprep.subr.msk.bf16.mxu1 %vm101_vm0, %v3180_v11  ;;  %v3510_v11 = vld [vmem:[#allocation5 + $0x1c4] ss:$16 sps:$4 sm:$0xff]  }
  0x5c   :  { %3174 = vmatmul.mubr.msk.bf16.vlgmr.msra.gmra.mxu0 %vm97_vm1, %v54_v7  ;;  %v3504_v7 = vld [vmem:[#allocation5 + $0x1e4] ss:$16 sps:$4 sm:$0xff]  }
  0x5d   :  { %3182 = vmatmul.mubr.msk.bf16.vlgmr.msra.gmra.mxu1 %vm97_vm1, %v55_v16  ;;  %971 = vmatpush1.bf16.msra.mxu0 %v904_v17  ;;  %v3514_v17 = vld [vmem:[#allocation5 + $0x1a0] ss:$16 sps:$4 sm:$0xff]  }
  0x5e   :  { %1012 = vmatpush1.bf16.msra.mxu1 %v910_v18  ;;  %988 = vmatprep.mubr.bf16.mxu0 %v3828_v0  ;;  %v3517_v18 = vld [vmem:[#allocation5 + $0x3e0] ss:$16 sps:$4 sm:$0xff]  }
  0x5f   :  { %1029 = vmatprep.mubr.bf16.mxu1 %v3828_v0  ;;  %3193 = vmatprep.subr.msk.bf16.mxu0 %vm101_vm0, %v3188_v19  ;;  %v3522_v19 = vld [vmem:[#allocation5 + $0x184] ss:$16 sps:$4 sm:$0xff]  }
  0x60   :  { %3195 = vmatprep.subr.msk.bf16.mxu1 %vm101_vm0, %v3190_v20  ;;  %v3525_v20 = vld [vmem:[#allocation5 + $0x3c4] ss:$16 sps:$4 sm:$0xff]  }
  0x64   :  { %3184 = vmatmul.mubr.msk.bf16.vlgmr.msra.gmra.mxu0 %vm97_vm1, %v55_v16 }
  0x65   :  { %3186 = vmatmul.mubr.msk.bf16.vlgmr.msra.gmra.mxu1 %vm97_vm1, %v55_v16  ;;  %1089 = vmatpush1.bf16.msra.mxu0 %v1057_v25  ;;  %v3519_v16 = vld [vmem:[#allocation5 + $0x3e4] ss:$16 sps:$4 sm:$0xff]   ;;  %v3526_v25 = vld [vmem:[#allocation5 + $0x160] ss:$16 sps:$4 sm:$0xff]  }
  0x66   :  { %1130 = vmatpush1.bf16.msra.mxu1 %v1063_v26  ;;  %1106 = vmatprep.mubr.bf16.mxu0 %v3828_v0  ;;  %v3529_v26 = vld [vmem:[#allocation5 + $0x3a0] ss:$16 sps:$4 sm:$0xff]  }
  0x67   :  { %1147 = vmatprep.mubr.bf16.mxu1 %v3828_v0  ;;  %3197 = vmatprep.subr.msk.bf16.mxu0 %vm101_vm0, %v3192_v27  ;;  %v3534_v27 = vld [vmem:[#allocation5 + $0x144] ss:$16 sps:$4 sm:$0xff]  }
  0x68   :  { %3205 = vmatprep.subr.msk.bf16.mxu1 %vm101_vm0, %v3200_v28  ;;  %v3537_v28 = vld [vmem:[#allocation5 + $0x384] ss:$16 sps:$4 sm:$0xff]  }
  0x6c   :  { %3194 = vmatmul.mubr.msk.bf16.vlgmr.msra.gmra.mxu0 %vm97_vm1, %v56_v33 }
  0x6d   :  { %3196 = vmatmul.mubr.msk.bf16.vlgmr.msra.gmra.mxu1 %vm97_vm1, %v56_v33  ;;  %1171 = vmatpush1.bf16.msra.mxu0 %v1069_v34  ;;  %v3541_v34 = vld [vmem:[#allocation5 + $0x360] ss:$16 sps:$4 sm:$0xff]  }
  0x6e   :  { %1248 = vmatpush1.bf16.msra.mxu1 %v1216_v35  ;;  %1188 = vmatprep.mubr.bf16.mxu0 %v3828_v0  ;;  %v3546_v35 = vld [vmem:[#allocation5 + $0x104] ss:$16 sps:$4 sm:$0xff]  }
  0x6f   :  { %1265 = vmatprep.mubr.bf16.mxu1 %v3828_v0  ;;  %3207 = vmatprep.subr.msk.bf16.mxu0 %vm101_vm0, %v3202_v36  ;;  %v3549_v36 = vld [vmem:[#allocation5 + $0x344] ss:$16 sps:$4 sm:$0xff]  }
  0x70   :  { %3209 = vmatprep.subr.msk.bf16.mxu1 %vm101_vm0, %v3204_v37  ;;  %v3544_v37 = vld [vmem:[#allocation5 + $0x100] ss:$16 sps:$4 sm:$0xff]  }
  0x74   :  { %3198 = vmatmul.mubr.msk.bf16.vlgmr.msra.gmra.mxu0 %vm97_vm1, %v56_v33  ;;  %v3538_v33 = vld [vmem:[#allocation5 + $0x120] ss:$16 sps:$4 sm:$0xff]  }
  0x75   :  { %3206 = vmatmul.mubr.msk.bf16.vlgmr.msra.gmra.mxu1 %vm97_vm1, %v57_v40  ;;  %1289 = vmatpush1.bf16.msra.mxu0 %v1222_v41  ;;  %v3550_v41 = vld [vmem:[#allocation5 + $0x320] ss:$16 sps:$4 sm:$0xff]  }
  0x76   :  { %1330 = vmatpush1.bf16.msra.mxu1 %v1228_v42  ;;  %1306 = vmatprep.mubr.bf16.mxu0 %v3828_v0  ;;  %v3558_v42 = vld [vmem:[#allocation5 + $0x304] ss:$16 sps:$4 sm:$0xff]  }
  0x77   :  { %1347 = vmatprep.mubr.bf16.mxu1 %v3828_v0  ;;  %2845 = vmatprep.subr.bf16.mxu0 %v3462_v43  ;;  %v3474_v0 = vld [vmem:[#allocation5 + $0x84] ss:$16 sps:$4 sm:$0xff]   ;;  %v3556_v43 = vld [vmem:[#allocation5 + $0x300] ss:$16 sps:$4 sm:$0xff]  }
  0x78   :  { %2886 = vmatprep.subr.bf16.mxu1 %v3471_v48 }
  0x7c   :  { %3208 = vmatmul.mubr.msk.bf16.vlgmr.msra.gmra.mxu0 %vm97_vm1, %v57_v40 }
  0x7d   :  { %3210 = vmatmul.mubr.msk.bf16.vlgmr.msra.gmra.mxu1 %vm97_vm1, %v57_v40  ;;  %2846 = vmatpush1.bf16.msra.mxu0 %v3460_v44  ;;  %v3555_v40 = vld [vmem:[#allocation5 + $0x4e4] ss:$16 sps:$4 sm:$0xff]   ;;  %v3567_v44 = vld [vmem:[#allocation5 + $0xec] ss:$16 sps:$4 sm:$0xff]  }
  0x7e   :  { %2847 = vmatprep.subr.bf16.mxu0 %v3465_v45  ;;  %2887 = vmatpush1.bf16.msra.mxu1 %v3469_v50 }
  0x7f   :  { %2888 = vmatprep.subr.bf16.mxu1 %v3477_v51 }
  0x81   :  { %2848 = vmatpush1.bf16.msra.mxu0 %v3463_v46 }
  0x82   :  { %2849 = vmatprep.subr.bf16.mxu0 %v3468_v47  ;;  %2889 = vmatpush1.bf16.msra.mxu1 %v3475_v53 }
  0x83   :  { %2890 = vmatprep.subr.bf16.mxu1 %v3483_v55 }
  0x85   :  { %2850 = vmatpush1.bf16.msra.mxu0 %v3466_v49 }
  0x86   :  { %2851 = vmatprep.subr.bf16.mxu0 %v3474_v0  ;;  %2891 = vmatpush1.bf16.msra.mxu1 %v3481_v57 }
  0x87   :  { %2892 = vmatprep.subr.bf16.mxu1 %v3489_v59 }
  0x89   :  { %2852 = vmatpush1.bf16.msra.mxu0 %v3472_v52 }
  0x8a   :  { %2853 = vmatprep.subr.bf16.mxu0 %v3480_v54  ;;  %2893 = vmatpush1.bf16.msra.mxu1 %v3487_v61 }
  0x8b   :  { %2894 = vmatprep.subr.bf16.mxu1 %v3495_v63 }
  0x8d   :  { %2854 = vmatpush1.bf16.msra.mxu0 %v3478_v56 }
  0x8e   :  { %2855 = vmatprep.subr.bf16.mxu0 %v3486_v58  ;;  %2895 = vmatpush1.bf16.msra.mxu1 %v3493_v2 }
  0x8f   :  { %2896 = vmatprep.subr.bf16.mxu1 %v3501_v4 }
  0x91   :  { %2856 = vmatpush1.bf16.msra.mxu0 %v3484_v60 }
  0x92   :  { %2857 = vmatprep.subr.bf16.mxu0 %v3492_v62  ;;  %2897 = vmatpush1.bf16.msra.mxu1 %v3499_v6 }
  0x93   :  { %2898 = vmatprep.subr.bf16.mxu1 %v3507_v8 }
  0x95   :  { %2858 = vmatpush1.bf16.msra.mxu0 %v3490_v1 }
  0x96   :  { %2859 = vmatprep.subr.bf16.mxu0 %v3498_v3  ;;  %2899 = vmatpush1.bf16.msra.mxu1 %v3505_v10 }
  0x97   :  { %2900 = vmatprep.subr.bf16.mxu1 %v3513_v12 }
  0x99   :  { %2860 = vmatpush1.bf16.msra.mxu0 %v3496_v5 }
  0x9a   :  { %2861 = vmatprep.subr.bf16.mxu0 %v3504_v7  ;;  %2901 = vmatpush1.bf16.msra.mxu1 %v3511_v14 }
  0x9b   :  { %2902 = vmatprep.subr.bf16.mxu1 %v3519_v16 }
  0x9c   :  { %v3990_v49 = vpop.permute.xlu0 %1359 }
  0x9d   :  { %2862 = vmatpush2.bf16.msra.mxu0 %v3502_v9  ;;  %v1361_v51 = vrot.slane %v3990_v49, 1 }
  0x9e   :  { %2863 = vmatprep.subr.bf16.mxu0 %v3510_v11  ;;  %2903 = vmatpush2.bf16.msra.mxu1 %v3517_v18 }
  0x9f   :  { %2904 = vmatprep.subr.bf16.mxu1 %v3525_v20 }
  0xa1   :  { %2864 = vmatpush2.bf16.msra.mxu0 %v3508_v13 }
  0xa2   :  { %2865 = vmatprep.subr.bf16.mxu0 %v3516_v15  ;;  %2905 = vmatpush2.bf16.msra.mxu1 %v3523_v22 }
  0xa3   :  { %2906 = vmatprep.subr.bf16.mxu1 %v3531_v24 }
  0xa5   :  { %2866 = vmatpush2.bf16.msra.mxu0 %v3514_v17 }
  0xa6   :  { %2867 = vmatprep.subr.bf16.mxu0 %v3522_v19  ;;  %2907 = vmatpush2.bf16.msra.mxu1 %v3529_v26 }
  0xa7   :  { %2908 = vmatprep.subr.bf16.mxu1 %v3537_v28 }
  0xa9   :  { %2868 = vmatpush2.bf16.msra.mxu0 %v3520_v21 }
  0xaa   :  { %2869 = vmatprep.subr.bf16.mxu0 %v3528_v23  ;;  %2909 = vmatpush2.bf16.msra.mxu1 %v3535_v30 }
  0xab   :  { %2910 = vmatprep.subr.bf16.mxu1 %v3543_v32 }
  0xad   :  { %2870 = vmatpush2.bf16.msra.mxu0 %v3526_v25 }
  0xae   :  { %2871 = vmatprep.subr.bf16.mxu0 %v3534_v27  ;;  %2911 = vmatpush2.bf16.msra.mxu1 %v3541_v34 }
  0xaf   :  { %2912 = vmatprep.subr.bf16.mxu1 %v3549_v36 }
  0xb1   :  { %2872 = vmatpush2.bf16.msra.mxu0 %v3532_v29 }
  0xb2   :  { %2873 = vmatprep.subr.bf16.mxu0 %v3540_v31  ;;  %2913 = vmatpush2.bf16.msra.mxu1 %v3547_v38 }
  0xb3   :  { %2914 = vmatprep.subr.bf16.mxu1 %v3552_v39 }
  0xb5   :  { %2874 = vmatpush2.bf16.msra.mxu0 %v3538_v33 }
  0xb6   :  { %2875 = vmatprep.subr.bf16.mxu0 %v3546_v35  ;;  %2915 = vmatpush2.bf16.msra.mxu1 %v3550_v41 }
  0xb7   :  { %2916 = vmatprep.subr.bf16.mxu1 %v3558_v42 }
  0xb9   :  { %2876 = vmatpush2.bf16.msra.mxu0 %v3544_v37 }
  0xba   :  { %2927 = vmatprep.subr.bf16.mxu0 %v3555_v40  ;;  %2917 = vmatpush2.bf16.msra.mxu1 %v3556_v43 }
  0xbb   :  { %2968 = vmatprep.subr.bf16.mxu1 %v3567_v44 }
  0xe4   :  { %v154_v45 = vpop.f32.mrf.mxu0 }
  0xe5   :  { %v195_v46 = vpop.f32.mrf.mxu1  ;;  %v1376_v54 = vmul.f32 %v3990_v49, %v154_v45 }
  0xe6   :  { %v156_v47 = vpop.f32.mrf.mxu0  ;;  %v1378_v9 = vmul.f32 %v3990_v49, %v195_v46 }
  0xe7   :  { %v197_v48 = vpop.f32.mrf.mxu1  ;;  %v1377_v55 = vmul.f32 %v3990_v49, %v156_v47  ;;  %v1424_v61 = vpack.c.bf16 %v1376_v54, %v1376_v54 }
  0xe8   :  { %v158_v50 = vpop.f32.mrf.mxu0  ;;  %v1379_v14 = vmul.f32 %v3990_v49, %v197_v48  ;;  %v1426_v23 = vpack.c.bf16 %v1378_v9, %v1378_v9 }
  0xe9   :  { %v199_v0 = vpop.f32.mrf.mxu1  ;;  %v1425_v1 = vpack.c.bf16 %v1377_v55, %v1377_v55  ;;  %v1734_v10 = vunpack.c.l.b16 %v1424_v61 }
  0xea   :  { %v159_v52 = vpop.f32.mrf.mxu0  ;;  %v1427_v33 = vpack.c.bf16 %v1379_v14, %v1379_v14  ;;  %v1736_v38 = vunpack.c.l.b16 %v1426_v23 }
  0xeb   :  { %v200_v53 = vpop.f32.mrf.mxu1  ;;  %v1735_v13 = vunpack.c.l.b16 %v1425_v1 }
  0xec   :  { %v236_v56 = vpop.f32.mrf.mxu0  ;;  %v1737_v50 = vunpack.c.l.b16 %v1427_v33 }
  0xed   :  { %v313_v57 = vpop.f32.mrf.mxu1  ;;  %v1380_v6 = vmul.f32 %v3990_v49, %v236_v56 }
  0xee   :  { %v1382_v58 = vmul.f32 %v1361_v51, %v313_v57  ;;  %v238_v59 = vpop.f32.mrf.mxu0 }
  0xef   :  { %v315_v60 = vpop.f32.mrf.mxu1  ;;  %v1428_v21 = vpack.c.bf16 %v1380_v6, %v1380_v6  ;;  %v1381_v22 = vmul.f32 %v3990_v49, %v238_v59 }
  0xf0   :  { %v1430_v62 = vpack.c.bf16 %v1382_v58, %v1382_v58  ;;  %v1383_v63 = vmul.f32 %v1361_v51, %v315_v60  ;;  %v240_v2 = vpop.f32.mrf.mxu0 }
  0xf1   :  { %v317_v3 = vpop.f32.mrf.mxu1  ;;  %v1429_v37 = vpack.c.bf16 %v1381_v22, %v1381_v22  ;;  %v1738_v42 = vunpack.c.l.b16 %v1428_v21 }
  0xf2   :  { %v1740_v4 = vunpack.c.l.b16 %v1430_v62  ;;  %v1431_v5 = vpack.c.bf16 %v1383_v63, %v1383_v63  ;;  %v241_v7 = vpop.f32.mrf.mxu0  ;;  %v1362_v63 = vrot.slane %v3990_v49, 2 }
  0xf3   :  { %v318_v8 = vpop.f32.mrf.mxu1  ;;  %v1739_v53 = vunpack.c.l.b16 %v1429_v37 }
  0xf4   :  { %v1782_v11 = vrot.slane %v1740_v4, 7  ;;  %v1741_v12 = vunpack.c.l.b16 %v1431_v5  ;;  %v354_v15 = vpop.f32.mrf.mxu0 }
  0xf5   :  { %v395_v16 = vpop.f32.mrf.mxu1  ;;  %v1384_v19 = vmul.f32 %v1361_v51, %v354_v15 }
  0xf6   :  { %v3999_v17 = vsel %vm1783_vm2, %v1782_v11, %v1734_v10  ;;  %v1803_v18 = vrot.slane %v1741_v12, 7  ;;  %v1386_v20 = vmul.f32 %v1361_v51, %v395_v16  ;;  %v356_v24 = vpop.f32.mrf.mxu0 }
  0xf7   :  { %v397_v25 = vpop.f32.mrf.mxu1  ;;  %v1432_v27 = vpack.c.bf16 %v1384_v19, %v1384_v19  ;;  %v1385_v29 = vmul.f32 %v1361_v51, %v356_v24 }
  0xf8   :  { %v4003_v26 = vsel %vm1783_vm2, %v1803_v18, %v1735_v13  ;;  %v1434_v28 = vpack.c.bf16 %v1386_v20, %v1386_v20  ;;  %v1387_v30 = vmul.f32 %v1361_v51, %v397_v25  ;;  %v358_v31 = vpop.f32.mrf.mxu0  ;;  %v1363_v13 = vrot.slane %v3990_v49, 3 }
  0xf9   :  { %v399_v32 = vpop.f32.mrf.mxu1  ;;  %v1742_v34 = vunpack.c.l.b16 %v1432_v27  ;;  %v1433_v36 = vpack.c.bf16 %v1385_v29, %v1385_v29 }
  0xfa   :  { %v1744_v35 = vunpack.c.l.b16 %v1434_v28  ;;  %v1435_v39 = vpack.c.bf16 %v1387_v30, %v1387_v30  ;;  %v359_v40 = vpop.f32.mrf.mxu0 }
  0xfb   :  { %v400_v41 = vpop.f32.mrf.mxu1  ;;  %v1817_v43 = vrot.slane %v1742_v34, 7  ;;  %v1743_v45 = vunpack.c.l.b16 %v1433_v36 }
  0xfc   :  { %v1845_v44 = vrot.slane %v1744_v35, 7  ;;  %v1745_v46 = vunpack.c.l.b16 %v1435_v39  ;;  %v472_v47 = vpop.f32.mrf.mxu0 }
  0xfd   :  { %v513_v48 = vpop.f32.mrf.mxu1  ;;  %v4006_v0 = vsel %vm1783_vm2, %v1817_v43, %v1736_v38  ;;  %v1831_v52 = vrot.slane %v1743_v45, 7  ;;  %v1388_v28 = vmul.f32 %v1362_v63, %v472_v47 }
  0xfe   :  { %v1846_v51 = vsel %vm1783_vm2, %v1845_v44, %v1738_v42  ;;  %v1859_v54 = vrot.slane %v1745_v46, 7  ;;  %v474_v55 = vpop.f32.mrf.mxu0  ;;  %v1390_v33 = vmul.f32 %v1362_v63, %v513_v48  ;;  %v4022_v46 = vrot.slane %v3990_v49, 4 }
  0xff   :  { %v515_v56 = vpop.f32.mrf.mxu1  ;;  %v4010_v57 = vsel %vm1783_vm2, %v1831_v52, %v1737_v50  ;;  %v1389_v34 = vmul.f32 %v1362_v63, %v474_v55  ;;  %v1436_v37 = vpack.c.bf16 %v1388_v28, %v1388_v28 }
 0x100   :  { %v4013_v58 = vsel %vm1783_vm2, %v1859_v54, %v1739_v53  ;;  %v476_v59 = vpop.f32.mrf.mxu0  ;;  %v1391_v40 = vmul.f32 %v1362_v63, %v515_v56  ;;  %v1438_v41 = vpack.c.bf16 %v1390_v33, %v1390_v33 }
 0x101   :  { %v517_v60 = vpop.f32.mrf.mxu1  ;;  %v1437_v42 = vpack.c.bf16 %v1389_v34, %v1389_v34  ;;  %v1746_v45 = vunpack.c.l.b16 %v1436_v37 }
 0x102   :  { %v477_v61 = vpop.f32.mrf.mxu0  ;;  %v1439_v48 = vpack.c.bf16 %v1391_v40, %v1391_v40  ;;  %v1748_v53 = vunpack.c.l.b16 %v1438_v41 }
 0x103   :  { %v518_v62 = vpop.f32.mrf.mxu1  ;;  %v1747_v54 = vunpack.c.l.b16 %v1437_v42  ;;  %v1785_v56 = vrot.slane %v1746_v45, 6 }
 0x104   :  { %v554_v1 = vpop.f32.mrf.mxu0  ;;  %v4026_v62 = vrot.slane %v3990_v49, 5 }
 0x105   :  { %v631_v2 = vpop.f32.mrf.mxu1  ;;  %v1392_v3 = vmul.f32 %v1362_v63, %v554_v1 }
 0x106   :  { %v556_v4 = vpop.f32.mrf.mxu0  ;;  %v1394_v47 = vmul.f32 %v1363_v13, %v631_v2 }
 0x107   :  { %v633_v5 = vpop.f32.mrf.mxu1  ;;  %v1440_v6 = vpack.c.bf16 %v1392_v3, %v1392_v3  ;;  %v1393_v60 = vmul.f32 %v1362_v63, %v556_v4  ;;  %v1805_v63 = vrot.slane %v1747_v54, 6 }
 0x108   :  { %v558_v7 = vpop.f32.mrf.mxu0  ;;  %v1442_v1 = vpack.c.bf16 %v1394_v47, %v1394_v47  ;;  %v1395_v3 = vmul.f32 %v1363_v13, %v633_v5  ;;  %v1787_v5 = vsel %vm1786_vm3, %v1785_v56, %v3999_v17 }
 0x109   :  { %v635_v8 = vpop.f32.mrf.mxu1  ;;  %v1750_v9 = vunpack.c.l.b16 %v1440_v6 }
 0x10a   :  { %v559_v10 = vpop.f32.mrf.mxu0  ;;  %v4029_v8 = vrot.slane %v3990_v49, 6 }
 0x10b   :  { %v636_v11 = vpop.f32.mrf.mxu1  ;;  %v1847_v12 = vrot.slane %v1750_v9, 6  ;;  %v1749_v9 = vunpack.c.l.b16 %v1439_v48 }
 0x10c   :  { %v672_v14 = vpop.f32.mrf.mxu0 }
 0x10d   :  { %v713_v15 = vpop.f32.mrf.mxu1  ;;  %v1848_v16 = vsel %vm1786_vm3, %v1847_v12, %v1846_v51  ;;  %v1396_v6 = vmul.f32 %v1363_v13, %v672_v14  ;;  %v4032_v12 = vrot.slane %v3990_v49, 7  ;;  %v1441_v14 = vpack.c.bf16 %v1393_v60, %v1393_v60 }
 0x10e   :  { %v1398_v18 = vmul.f32 %v1363_v13, %v713_v15  ;;  %v674_v19 = vpop.f32.mrf.mxu0  ;;  %v1819_v15 = vrot.slane %v1748_v53, 6 }
 0x10f   :  { %v715_v20 = vpop.f32.mrf.mxu1  ;;  %v1397_v10 = vmul.f32 %v1363_v13, %v674_v19  ;;  %v1443_v19 = vpack.c.bf16 %v1395_v3, %v1395_v3 }
 0x110   :  { %v1446_v21 = vpack.c.bf16 %v1398_v18, %v1398_v18  ;;  %v676_v22 = vpop.f32.mrf.mxu0  ;;  %v1399_v4 = vmul.f32 %v1363_v13, %v715_v20  ;;  %v1833_v13 = vrot.slane %v1749_v9, 6  ;;  %v1820_v17 = vsel %vm1786_vm3, %v1819_v15, %v4006_v0 }
 0x111   :  { %v717_v23 = vpop.f32.mrf.mxu1  ;;  %v1445_v20 = vpack.c.bf16 %v1397_v10, %v1397_v10  ;;  %v1753_v42 = vunpack.c.l.b16 %v1443_v19 }
 0x112   :  { %v1756_v24 = vunpack.c.l.b16 %v1446_v21  ;;  %v677_v25 = vpop.f32.mrf.mxu0  ;;  %v1447_v33 = vpack.c.bf16 %v1399_v4, %v1399_v4 }
 0x113   :  { %v718_v27 = vpop.f32.mrf.mxu1  ;;  %v1444_v25 = vpack.c.bf16 %v1396_v6, %v1396_v6  ;;  %v1755_v47 = vunpack.c.l.b16 %v1445_v20 }
 0x114   :  { %v1849_v29 = vrot.slane %v1756_v24, 5  ;;  %v790_v30 = vpop.f32.mrf.mxu0  ;;  %v1752_v24 = vunpack.c.l.b16 %v1442_v1  ;;  %v1757_v53 = vunpack.c.l.b16 %v1447_v33 }
 0x115   :  { %v831_v31 = vpop.f32.mrf.mxu1  ;;  %v1835_v10 = vrot.slane %v1755_v47, 5 }
 0x116   :  { %v1850_v32 = vsel %vm1789_vm4, %v1849_v29, %v1848_v16  ;;  %v792_v35 = vpop.f32.mrf.mxu0  ;;  %v1400_v16 = vmul.f32 %v4022_v46, %v790_v30  ;;  %v1402_v22 = vmul.f32 %v4022_v46, %v831_v31  ;;  %v1806_v31 = vsel %vm1786_vm3, %v1805_v63, %v4003_v26 }
 0x117   :  { %v4019_v36 = vpop.f32.mrf.mxu1  ;;  %v1401_v49 = vmul.f32 %v4022_v46, %v792_v35  ;;  %v1751_v35 = vunpack.c.l.b16 %v1441_v14 }
 0x118   :  { %v794_v38 = vpop.f32.mrf.mxu0  ;;  %v1448_v34 = vpack.c.bf16 %v1400_v16, %v1400_v16  ;;  %v1403_v40 = vmul.f32 %v4022_v46, %v4019_v36 }
 0x119   :  { %v835_v39 = vpop.f32.mrf.mxu1 }
 0x11a   :  { %v795_v43 = vpop.f32.mrf.mxu0  ;;  %v1450_v39 = vpack.c.bf16 %v1402_v22, %v1402_v22  ;;  %v1758_v54 = vunpack.c.l.b16 %v1448_v34  ;;  %v1451_v3 = vpack.c.bf16 %v1403_v40, %v1403_v40 }
 0x11b   :  { %v836_v44 = vpop.f32.mrf.mxu1  ;;  %v1754_v43 = vunpack.c.l.b16 %v1444_v25 }
 0x11c   :  { %v872_v50 = vpop.f32.mrf.mxu0  ;;  %v1449_v44 = vpack.c.bf16 %v1401_v49, %v1401_v49  ;;  %v1760_v1 = vunpack.c.l.b16 %v1450_v39  ;;  %v1791_v63 = vrot.slane %v1758_v54, 4 }
 0x11d   :  { %v949_v51 = vpop.f32.mrf.mxu1  ;;  %v1404_v52 = vmul.f32 %v4022_v46, %v872_v50 }
 0x11e   :  { %v874_v55 = vpop.f32.mrf.mxu0  ;;  %v1406_v26 = vmul.f32 %v4026_v62, %v949_v51  ;;  %v1821_v51 = vrot.slane %v1754_v43, 5  ;;  %v1759_v9 = vunpack.c.l.b16 %v1449_v44  ;;  %v1823_v14 = vrot.slane %v1760_v1, 4 }
 0x11f   :  { %v951_v59 = vpop.f32.mrf.mxu1  ;;  %v1452_v61 = vpack.c.bf16 %v1404_v52, %v1404_v52  ;;  %v1405_v50 = vmul.f32 %v4022_v46, %v874_v55  ;;  %v1834_v52 = vsel %vm1786_vm3, %v1833_v13, %v4010_v57 }
 0x120   :  { %v876_v2 = vpop.f32.mrf.mxu0  ;;  %v1407_v36 = vmul.f32 %v4026_v62, %v951_v59  ;;  %v1863_v59 = vrot.slane %v1757_v53, 5  ;;  %v1809_v25 = vrot.slane %v1759_v9, 4  ;;  %v1822_v20 = vsel %vm1789_vm4, %v1821_v51, %v1820_v17 }
 0x121   :  { %v953_v7 = vpop.f32.mrf.mxu1  ;;  %v1762_v11 = vunpack.c.l.b16 %v1452_v61  ;;  %v1861_v61 = vrot.slane %v1751_v35, 6  ;;  %v1453_v57 = vpack.c.bf16 %v1405_v50, %v1405_v50  ;;  %v4078_v40 = vsel %vm1792_vm5, %v1823_v14, %v1822_v20 }
 0x122   :  { %v877_v18 = vpop.f32.mrf.mxu0  ;;  %v1807_v7 = vrot.slane %v1753_v42, 5  ;;  %v1455_v4 = vpack.c.bf16 %v1407_v36, %v1407_v36 }
 0x123   :  { %v954_v21 = vpop.f32.mrf.mxu1  ;;  %v1851_v23 = vrot.slane %v1762_v11, 4  ;;  %v1454_v11 = vpack.c.bf16 %v1406_v26, %v1406_v26  ;;  %v4071_v33 = vunpack.c.l.b16 %v1453_v57 }
 0x124   :  { %v990_v27 = vpop.f32.mrf.mxu0  ;;  %v1808_v19 = vsel %vm1789_vm4, %v1807_v7, %v1806_v31  ;;  %v1765_v34 = vunpack.c.l.b16 %v1455_v4 }
 0x125   :  { %v1031_v28 = vpop.f32.mrf.mxu1  ;;  %v1852_v29 = vsel %vm1792_vm5, %v1851_v23, %v1850_v32  ;;  %v1788_v32 = vrot.slane %v1752_v24, 5  ;;  %v1408_v22 = vmul.f32 %v4026_v62, %v990_v27  ;;  %v1862_v24 = vsel %vm1786_vm3, %v1861_v61, %v4013_v58 }
 0x126   :  { %v1410_v30 = vmul.f32 %v4026_v62, %v1031_v28  ;;  %v992_v37 = vpop.f32.mrf.mxu0  ;;  %v4074_v27 = vsel %vm1789_vm4, %v1863_v59, %v1862_v24  ;;  %v1865_v26 = vrot.slane %v4071_v33, 4 }
 0x127   :  { %v4045_v38 = vpop.f32.mrf.mxu1  ;;  %v1790_v2 = vsel %vm1789_vm4, %v1788_v32, %v1787_v5  ;;  %v4059_v5 = vunpack.c.l.b16 %v1451_v3  ;;  %v1409_v49 = vmul.f32 %v4026_v62, %v992_v37  ;;  %v1810_v32 = vsel %vm1792_vm5, %v1809_v25, %v1808_v19 }
 0x128   :  { %v1458_v41 = vpack.c.bf16 %v1410_v30, %v1410_v30  ;;  %v994_v45 = vpop.f32.mrf.mxu0  ;;  %v1764_v30 = vunpack.c.l.b16 %v1454_v11  ;;  %v1793_v37 = vsel %vm1792_vm5, %v1791_v63, %v1790_v2  ;;  %v1411_v43 = vmul.f32 %v4026_v62, %v4045_v38 }
 0x129   :  { %v1035_v0 = vpop.f32.mrf.mxu1  ;;  %v1837_v17 = vrot.slane %v4059_v5, 4  ;;  %v1457_v42 = vpack.c.bf16 %v1409_v49, %v1409_v49 }
 0x12a   :  { %v1768_v48 = vunpack.c.l.b16 %v1458_v41  ;;  %v995_v56 = vpop.f32.mrf.mxu0  ;;  %v1456_v41 = vpack.c.bf16 %v1408_v22, %v1408_v22  ;;  %v1794_v47 = vrot.slane %v1764_v30, 3 }
 0x12b   :  { %v1036_v60 = vpop.f32.mrf.mxu1  ;;  %v4093_v3 = vunpack.c.l.b16 %v1457_v42 }
 0x12c   :  { %v1853_v6 = vrot.slane %v1768_v48, 3  ;;  %v1108_v46 = vpop.f32.mrf.mxu0  ;;  %v4089_v62 = vunpack.c.l.b16 %v1456_v41 }
 0x12d   :  { %v1149_v55 = vpop.f32.mrf.mxu1  ;;  %v1412_v16 = vmul.f32 %v4029_v8, %v1108_v46  ;;  %v1796_v46 = vsel %vm1795_vm6, %v1794_v47, %v1793_v37 }
 0x12e   :  { %v4056_v15 = vsel %vm1795_vm6, %v1853_v6, %v1852_v29  ;;  %v1110_v18 = vpop.f32.mrf.mxu0  ;;  %v4069_v29 = vsel %vm1789_vm4, %v1835_v10, %v1834_v52  ;;  %v1414_v44 = vmul.f32 %v4029_v8, %v1149_v55  ;;  %v1811_v52 = vrot.slane %v1765_v34, 3 }
 0x12f   :  { %v1151_v21 = vpop.f32.mrf.mxu1  ;;  %v1413_v23 = vmul.f32 %v4029_v8, %v1110_v18  ;;  %v1460_v58 = vpack.c.bf16 %v1412_v16, %v1412_v16  ;;  %v1459_v6 = vpack.c.bf16 %v1411_v43, %v1411_v43 }
 0x130   :  { %v1112_v28 = vpop.f32.mrf.mxu0  ;;  %v1415_v50 = vmul.f32 %v4029_v8, %v1151_v21  ;;  %v1462_v2 = vpack.c.bf16 %v1414_v44, %v1414_v44  ;;  %v1812_v18 = vsel %vm1795_vm6, %v1811_v52, %v1810_v32  ;;  %v1825_v21 = vrot.slane %v4089_v62, 3 }
 0x131   :  { %v1153_v13 = vpop.f32.mrf.mxu1  ;;  %v1461_v35 = vpack.c.bf16 %v1413_v23, %v1413_v23  ;;  %v1770_v53 = vunpack.c.l.b16 %v1460_v58  ;;  %v1839_v23 = vrot.slane %v4093_v3, 3  ;;  %v1769_v24 = vunpack.c.l.b16 %v1459_v6  ;;  %v3561_v3 = vld [vmem:[#allocation5 + $0x4c4] ss:$16 sps:$4 sm:$0xff]  }
 0x132   :  { %v1113_v31 = vpop.f32.mrf.mxu0  ;;  %v1463_v55 = vpack.c.bf16 %v1415_v50, %v1415_v50  ;;  %v1772_v19 = vunpack.c.l.b16 %v1462_v2  ;;  %v1838_v6 = vsel %vm1792_vm5, %v1837_v17, %v4069_v29 }
 0x133   :  { %v1154_v39 = vpop.f32.mrf.mxu1  ;;  %v1771_v54 = vunpack.c.l.b16 %v1461_v35  ;;  %v1797_v57 = vrot.slane %v1770_v53, 2 }
 0x134   :  { %v1190_v45 = vpop.f32.mrf.mxu0  ;;  %v1773_v13 = vunpack.c.l.b16 %v1463_v55  ;;  %v1840_v55 = vsel %vm1795_vm6, %v1839_v23, %v1838_v6  ;;  %v3570_v23 = vld [vmem:[#allocation5 + $0x484] ss:$16 sps:$4 sm:$0xff]   ;;  %v3625_v6 = vld [vmem:[#allocation5 + $0x1a8] ss:$16 sps:$4 sm:$0xff]  }
 0x135   :  { %v1267_v0 = vpop.f32.mrf.mxu1  ;;  %v1416_v48 = vmul.f32 %v4029_v8, %v1190_v45  ;;  %v1813_v59 = vrot.slane %v1771_v54, 2  ;;  %v1799_v58 = vsel %vm1798_vm7, %v1797_v57, %v1796_v46  ;;  %v1827_v45 = vrot.slane %v1772_v19, 2  ;;  %v3559_v57 = vld [vmem:[#allocation5 + $0x4c0] ss:$16 sps:$4 sm:$0xff]  }
 0x136   :  { %v1418_v36 = vmul.f32 %v4032_v12, %v1267_v0  ;;  %v1192_v56 = vpop.f32.mrf.mxu0  ;;  %v1826_v46 = vsel %vm1795_vm6, %v1825_v21, %v4078_v40  ;;  %v3568_v19 = vld [vmem:[#allocation5 + $0x480] ss:$16 sps:$4 sm:$0xff]  }
 0x137   :  { %v1269_v60 = vpop.f32.mrf.mxu1  ;;  %v1464_v38 = vpack.c.bf16 %v1416_v48, %v1416_v48  ;;  %v1417_v61 = vmul.f32 %v4029_v8, %v1192_v56  ;;  %v1814_v41 = vsel %vm1798_vm7, %v1813_v59, %v1812_v18  ;;  %v3553_v56 = vld [vmem:[#allocation5 + $0x4e0] ss:$16 sps:$4 sm:$0xff]   ;;  %v1828_v29 = vsel %vm1798_vm7, %v1827_v45, %v1826_v46  ;;  %v3565_v18 = vld [vmem:[#allocation5 + $0xe8] ss:$16 sps:$4 sm:$0xff]  }
 0x138   :  { %v1419_v1 = vmul.f32 %v4032_v12, %v1269_v60  ;;  %v1466_v7 = vpack.c.bf16 %v1418_v36, %v1418_v36  ;;  %v1194_v51 = vpop.f32.mrf.mxu0  ;;  %v1841_v60 = vrot.slane %v1773_v13, 2  ;;  %v3574_v13 = vld [vmem:[#allocation5 + $0x460] ss:$16 sps:$4 sm:$0xff]   ;;  %v3601_v45 = vld [vmem:[#allocation5 + $0x28] ss:$16 sps:$4 sm:$0xff]  }
 0x139   :  { %v1271_v9 = vpop.f32.mrf.mxu1  ;;  %v1774_v10 = vunpack.c.l.b16 %v1464_v38  ;;  %v1465_v4 = vpack.c.bf16 %v1417_v61, %v1417_v61  ;;  %v3628_v46 = vld [vmem:[#allocation5 + $0x540] ss:$16 sps:$4 sm:$0xff]  }
 0x13a   :  { %v1467_v11 = vpack.c.bf16 %v1419_v1, %v1419_v1  ;;  %v1776_v63 = vunpack.c.l.b16 %v1466_v7  ;;  %v1195_v16 = vpop.f32.mrf.mxu0  ;;  %v1866_v9 = vsel %vm1792_vm5, %v1865_v26, %v4074_v27  ;;  %v1842_v40 = vsel %vm1798_vm7, %v1841_v60, %v1840_v55  ;;  %v3564_v26 = vld [vmem:[#allocation5 + $0x4a4] ss:$16 sps:$4 sm:$0xff]   ;;  %v3621_v60 = vld [vmem:[#allocation5 + $0x1cc] ss:$16 sps:$4 sm:$0xff]  }
 0x13b   :  { %v1272_v8 = vpop.f32.mrf.mxu1  ;;  %v1855_v14 = vrot.slane %v1774_v10, 2  ;;  %v1775_v35 = vunpack.c.l.b16 %v1465_v4  ;;  %v3639_v55 = vld [vmem:[#allocation5 + $0x16c] ss:$16 sps:$4 sm:$0xff]  }
 0x13c   :  { %v1777_v22 = vunpack.c.l.b16 %v1467_v11  ;;  %v1800_v25 = vrot.slane %v1776_v63, 1  ;;  %v1308_v49 = vpop.f32.mrf.mxu0 }
 0x13d   :  { %v1349_v28 = vpop.f32.mrf.mxu1  ;;  %v1856_v20 = vsel %vm1798_vm7, %v1855_v14, %v4056_v15  ;;  %v1420_v34 = vmul.f32 %v4032_v12, %v1308_v49  ;;  %v1867_v15 = vrot.slane %v1769_v24, 3  ;;  %v1869_v38 = vrot.slane %v1775_v35, 2  ;;  %v3562_v14 = vld [vmem:[#allocation5 + $0x4a0] ss:$16 sps:$4 sm:$0xff]   ;;  %v3571_v24 = vld [vmem:[#allocation5 + $0xc8] ss:$16 sps:$4 sm:$0xff]  }
 0x13e   :  { %v1815_v30 = vrot.slane %v1777_v22, 1  ;;  %v1422_v31 = vmul.f32 %v4032_v12, %v1349_v28  ;;  %v1310_v39 = vpop.f32.mrf.mxu0  ;;  %v1802_v32 = vsel %vm1801_vm8, %v1800_v25, %v1799_v58  ;;  %v3573_v22 = vld [vmem:[#allocation5 + $0xcc] ss:$16 sps:$4 sm:$0xff]   ;;  %v3576_v49 = vld [vmem:[#allocation5 + $0x464] ss:$16 sps:$4 sm:$0xff]  }
 0x13f   :  { %v1351_v37 = vpop.f32.mrf.mxu1  ;;  %v1468_v42 = vpack.c.bf16 %v1420_v34, %v1420_v34  ;;  %v1421_v43 = vmul.f32 %v4032_v12, %v1310_v39  ;;  %v4109_v62 = vpack.c.b16 %v1802_v32, %v1802_v32  ;;  %v1868_v5 = vsel %vm1795_vm6, %v1867_v15, %v1866_v9  ;;  %v3579_v25 = vld [vmem:[#allocation5 + $0xac] ss:$16 sps:$4 sm:$0xff]   ;;  %v3577_v28 = vld [vmem:[#allocation5 + $0xa8] ss:$16 sps:$4 sm:$0xff]   ;;  %v3580_v58 = vld [vmem:[#allocation5 + $0x440] ss:$16 sps:$4 sm:$0xff]  }
 0x140   :  { %v1423_v44 = vmul.f32 %v4032_v12, %v1351_v37  ;;  %v1470_v0 = vpack.c.bf16 %v1422_v31, %v1422_v31  ;;  %v1312_v47 = vpop.f32.mrf.mxu0  ;;  %v1816_v50 = vsel %vm1801_vm8, %v1815_v30, %v1814_v41  ;;  %v1870_v59 = vsel %vm1798_vm7, %v1869_v38, %v1868_v5  ;;  %v3582_v30 = vld [vmem:[#allocation5 + $0x444] ss:$16 sps:$4 sm:$0xff]   ;;  %v3583_v34 = vld [vmem:[#allocation5 + $0x88] ss:$16 sps:$4 sm:$0xff]   ;;  %v3591_v35 = vld [vmem:[#allocation5 + $0x6c] ss:$16 sps:$4 sm:$0xff]  }
 0x141   :  { %v1353_v48 = vpop.f32.mrf.mxu1  ;;  %v1778_v52 = vunpack.c.l.b16 %v1468_v42  ;;  %v1469_v53 = vpack.c.bf16 %v1421_v43, %v1421_v43  ;;  %v1874_v36 = vpack.c.b16 %v1816_v50, %v1816_v50  ;;  %v3588_v31 = vld [vmem:[#allocation5 + $0x424] ss:$16 sps:$4 sm:$0xff]   ;;  %v3589_v39 = vld [vmem:[#allocation5 + $0x68] ss:$16 sps:$4 sm:$0xff]   ;;  %v3586_v37 = vld [vmem:[#allocation5 + $0x420] ss:$16 sps:$4 sm:$0xff]  }
 0x142   :  { %v1471_v54 = vpack.c.bf16 %v1423_v44, %v1423_v44  ;;  %v1780_v61 = vunpack.c.l.b16 %v1470_v0  ;;  %v1313_v1 = vpop.f32.mrf.mxu0  ;;  %v3597_v41 = vld [vmem:[#allocation5 + $0x4c] ss:$16 sps:$4 sm:$0xff]   ;;  %v3594_v32 = vld [vmem:[#allocation5 + $0x404] ss:$16 sps:$4 sm:$0xff]   ;;  %v3595_v42 = vld [vmem:[#allocation5 + $0x48] ss:$16 sps:$4 sm:$0xff]  }
 0x143   :  { %v1354_v12 = vpop.f32.mrf.mxu1  ;;  %v1829_v2 = vrot.slane %v1778_v52, 1  ;;  %v1779_v7 = vunpack.c.l.b16 %v1469_v53  ;;  %2877 = vmatprep.mubr.bf16.mxu0 %v1874_v36  ;;  %v3592_v43 = vld [vmem:[#allocation5 + $0x400] ss:$16 sps:$4 sm:$0xff]   ;;  %v3603_v44 = vld [vmem:[#allocation5 + $0x2c] ss:$16 sps:$4 sm:$0xff]  }
 0x144   :  { %v1781_v51 = vunpack.c.l.b16 %v1471_v54  ;;  %v1857_v10 = vrot.slane %v1780_v61, 1  ;;  %2878 = vmatmul.mubr.bf16.vlgmr.msra.gmra.mxu0 %v4109_v62  ;;  %v3600_v15 = vld [vmem:[#allocation5 + $0x5e4] ss:$16 sps:$4 sm:$0xff]   ;;  %v3598_v0 = vld [vmem:[#allocation5 + $0x5e0] ss:$16 sps:$4 sm:$0xff]  }
 0x145   :  { %v1843_v17 = vrot.slane %v1779_v7, 1  ;;  %2928 = vmatpush1.bf16.msra.mxu0 %v3553_v56  ;;  %v1830_v33 = vsel %vm1801_vm8, %v1829_v2, %v1828_v29  ;;  %v3609_v47 = vld [vmem:[#allocation5 + $0xc] ss:$16 sps:$4 sm:$0xff]   ;;  %v3606_v50 = vld [vmem:[#allocation5 + $0x5c4] ss:$16 sps:$4 sm:$0xff]  }
 0x146   :  { %v1871_v11 = vrot.slane %v1781_v51, 1  ;;  %v4127_v27 = vsel %vm1801_vm8, %v1857_v10, %v1856_v20  ;;  %2929 = vmatprep.subr.bf16.mxu0 %v3561_v3  ;;  %v4137_v21 = vpack.c.b16 %v1830_v33, %v1830_v33  ;;  %v3585_v20 = vld [vmem:[#allocation5 + $0x8c] ss:$16 sps:$4 sm:$0xff]   ;;  %v3607_v48 = vld [vmem:[#allocation5 + $0x8] ss:$16 sps:$4 sm:$0xff]  }
 0x147   :  { %v1844_v63 = vsel %vm1801_vm8, %v1843_v17, %v1842_v40  ;;  %v3604_v52 = vld [vmem:[#allocation5 + $0x5c0] ss:$16 sps:$4 sm:$0xff]   ;;  %v3615_v53 = vld [vmem:[#allocation5 + $0x1ec] ss:$16 sps:$4 sm:$0xff]   ;;  %v3612_v54 = vld [vmem:[#allocation5 + $0x5a4] ss:$16 sps:$4 sm:$0xff]  }
 0x148   :  { %v1872_v4 = vsel %vm1801_vm8, %v1871_v11, %v1870_v59  ;;  %v4133_v16 = vpack.c.b16 %v1844_v63, %v1844_v63  ;;  %v3610_v56 = vld [vmem:[#allocation5 + $0x5a0] ss:$16 sps:$4 sm:$0xff]   ;;  %v3618_v38 = vld [vmem:[#allocation5 + $0x584] ss:$16 sps:$4 sm:$0xff]   ;;  %v3619_v61 = vld [vmem:[#allocation5 + $0x1c8] ss:$16 sps:$4 sm:$0xff]  }
 0x149   :  { %v4135_v8 = vpack.c.b16 %v1872_v4, %v1872_v4  ;;  %2930 = vmatpush1.bf16.msra.mxu0 %v3559_v57  ;;  %v3616_v1 = vld [vmem:[#allocation5 + $0x580] ss:$16 sps:$4 sm:$0xff]   ;;  %v3627_v3 = vld [vmem:[#allocation5 + $0x1ac] ss:$16 sps:$4 sm:$0xff]   ;;  %v3624_v12 = vld [vmem:[#allocation5 + $0x564] ss:$16 sps:$4 sm:$0xff]   ;;  %v4144_v4 = vpack.c.b16 %v4127_v27, %v4127_v27 }
 0x14a   :  { %2918 = vmatprep.mubr.bf16.mxu1 %v4133_v16  ;;  %2931 = vmatprep.subr.bf16.mxu0 %v3564_v26  ;;  %v3622_v2 = vld [vmem:[#allocation5 + $0x560] ss:$16 sps:$4 sm:$0xff]   ;;  %v3633_v7 = vld [vmem:[#allocation5 + $0x18c] ss:$16 sps:$4 sm:$0xff]   ;;  %v3630_v51 = vld [vmem:[#allocation5 + $0x544] ss:$16 sps:$4 sm:$0xff]  }
 0x14b   :  { %2959 = vmatprep.mubr.bf16.mxu0 %v4135_v8  ;;  %2919 = vmatmul.mubr.bf16.vlgmr.msra.gmra.mxu1 %v4137_v21  ;;  %v3631_v9 = vld [vmem:[#allocation5 + $0x188] ss:$16 sps:$4 sm:$0xff]   ;;  %v3636_v10 = vld [vmem:[#allocation5 + $0x524] ss:$16 sps:$4 sm:$0xff]   ;;  %v3634_v29 = vld [vmem:[#allocation5 + $0x520] ss:$16 sps:$4 sm:$0xff]  }
 0x14c   :  { %2969 = vmatpush1.bf16.msra.mxu1 %v3565_v18  ;;  %3000 = vmatprep.mubr.bf16.mxu1 %v1874_v36  ;;  %v3613_v36 = vld [vmem:[#allocation5 + $0x1e8] ss:$16 sps:$4 sm:$0xff]   ;;  %v3645_v17 = vld [vmem:[#allocation5 + $0x14c] ss:$16 sps:$4 sm:$0xff]   ;;  %v3642_v11 = vld [vmem:[#allocation5 + $0x504] ss:$16 sps:$4 sm:$0xff]  }
 0x14d   :  { %2932 = vmatpush1.bf16.msra.mxu0 %v3562_v14  ;;  %2970 = vmatprep.subr.bf16.mxu1 %v3573_v22  ;;  %v3637_v5 = vld [vmem:[#allocation5 + $0x168] ss:$16 sps:$4 sm:$0xff]   ;;  %v3640_v33 = vld [vmem:[#allocation5 + $0x500] ss:$16 sps:$4 sm:$0xff]   ;;  %v3648_v40 = vld [vmem:[#allocation5 + $0x12c] ss:$16 sps:$4 sm:$0xff]  }
 0x14e   :  { %2933 = vmatprep.subr.bf16.mxu0 %v3570_v23  ;;  %v3643_v57 = vld [vmem:[#allocation5 + $0x148] ss:$16 sps:$4 sm:$0xff]   ;;  %v3651_v26 = vld [vmem:[#allocation5 + $0x2ec] ss:$16 sps:$4 sm:$0xff]  }
 0x14f   :  { %v3646_v59 = vld [vmem:[#allocation5 + $0x128] ss:$16 sps:$4 sm:$0xff]   ;;  %v3654_v18 = vld [vmem:[#allocation5 + $0x10c] ss:$16 sps:$4 sm:$0xff]  }
 0x150   :  { %2971 = vmatpush1.bf16.msra.mxu1 %v3571_v24  ;;  %v3649_v63 = vld [vmem:[#allocation5 + $0x2e8] ss:$16 sps:$4 sm:$0xff]   ;;  %v3657_v14 = vld [vmem:[#allocation5 + $0x2cc] ss:$16 sps:$4 sm:$0xff]  }
 0x151   :  { %2934 = vmatpush1.bf16.msra.mxu0 %v3568_v19  ;;  %2972 = vmatprep.subr.bf16.mxu1 %v3579_v25  ;;  %v3652_v22 = vld [vmem:[#allocation5 + $0x108] ss:$16 sps:$4 sm:$0xff]   ;;  %v3663_v24 = vld [vmem:[#allocation5 + $0x4ec] ss:$16 sps:$4 sm:$0xff]  }
 0x152   :  { %2935 = vmatprep.subr.bf16.mxu0 %v3576_v49  ;;  %v3655_v23 = vld [vmem:[#allocation5 + $0x2c8] ss:$16 sps:$4 sm:$0xff]   ;;  %v3660_v19 = vld [vmem:[#allocation5 + $0x2ac] ss:$16 sps:$4 sm:$0xff]  }
 0x153   :  { %v3661_v25 = vld [vmem:[#allocation5 + $0x4e8] ss:$16 sps:$4 sm:$0xff]   ;;  %v3669_v49 = vld [vmem:[#allocation5 + $0x4cc] ss:$16 sps:$4 sm:$0xff]  }
 0x154   :  { %2973 = vmatpush1.bf16.msra.mxu1 %v3577_v28  ;;  %v3658_v27 = vld [vmem:[#allocation5 + $0x2a8] ss:$16 sps:$4 sm:$0xff]   ;;  %v3666_v28 = vld [vmem:[#allocation5 + $0x28c] ss:$16 sps:$4 sm:$0xff]  }
 0x155   :  { %2936 = vmatpush1.bf16.msra.mxu0 %v3574_v13  ;;  %2974 = vmatprep.subr.bf16.mxu1 %v3585_v20  ;;  %v3667_v13 = vld [vmem:[#allocation5 + $0x4c8] ss:$16 sps:$4 sm:$0xff]   ;;  %v3675_v20 = vld [vmem:[#allocation5 + $0x4ac] ss:$16 sps:$4 sm:$0xff]  }
 0x156   :  { %2937 = vmatprep.subr.bf16.mxu0 %v3582_v30  ;;  %v3672_v30 = vld [vmem:[#allocation5 + $0x26c] ss:$16 sps:$4 sm:$0xff]  }
 0x158   :  { %2975 = vmatpush1.bf16.msra.mxu1 %v3583_v34  ;;  %v3673_v34 = vld [vmem:[#allocation5 + $0x4a8] ss:$16 sps:$4 sm:$0xff]  }
 0x159   :  { %2938 = vmatpush1.bf16.msra.mxu0 %v3580_v58  ;;  %2976 = vmatprep.subr.bf16.mxu1 %v3591_v35  ;;  %v3670_v58 = vld [vmem:[#allocation5 + $0x268] ss:$16 sps:$4 sm:$0xff]   ;;  %v3681_v35 = vld [vmem:[#allocation5 + $0x48c] ss:$16 sps:$4 sm:$0xff]  }
 0x15a   :  { %2939 = vmatprep.subr.bf16.mxu0 %v3588_v31  ;;  %v3678_v31 = vld [vmem:[#allocation5 + $0x24c] ss:$16 sps:$4 sm:$0xff]  }
 0x15c   :  { %2977 = vmatpush1.bf16.msra.mxu1 %v3589_v39  ;;  %v3676_v39 = vld [vmem:[#allocation5 + $0x248] ss:$16 sps:$4 sm:$0xff]  }
 0x15d   :  { %2940 = vmatpush1.bf16.msra.mxu0 %v3586_v37  ;;  %2978 = vmatprep.subr.bf16.mxu1 %v3597_v41  ;;  %v3684_v37 = vld [vmem:[#allocation5 + $0x22c] ss:$16 sps:$4 sm:$0xff]   ;;  %v3685_v41 = vld [vmem:[#allocation5 + $0x468] ss:$16 sps:$4 sm:$0xff]  }
 0x15e   :  { %2941 = vmatprep.subr.bf16.mxu0 %v3594_v32  ;;  %v3682_v32 = vld [vmem:[#allocation5 + $0x228] ss:$16 sps:$4 sm:$0xff]  }
 0x160   :  { %2979 = vmatpush1.bf16.msra.mxu1 %v3595_v42  ;;  %v3693_v42 = vld [vmem:[#allocation5 + $0x44c] ss:$16 sps:$4 sm:$0xff]  }
 0x161   :  { %2942 = vmatpush1.bf16.msra.mxu0 %v3592_v43  ;;  %2980 = vmatprep.subr.bf16.mxu1 %v3603_v44  ;;  %v3690_v43 = vld [vmem:[#allocation5 + $0x20c] ss:$16 sps:$4 sm:$0xff]   ;;  %v3691_v44 = vld [vmem:[#allocation5 + $0x448] ss:$16 sps:$4 sm:$0xff]  }
 0x162   :  { %2943 = vmatprep.subr.bf16.mxu0 %v3600_v15  ;;  %v3688_v15 = vld [vmem:[#allocation5 + $0x208] ss:$16 sps:$4 sm:$0xff]  }
 0x164   :  { %2981 = vmatpush1.bf16.msra.mxu1 %v3601_v45  ;;  %v3699_v45 = vld [vmem:[#allocation5 + $0x42c] ss:$16 sps:$4 sm:$0xff]  }
 0x165   :  { %2944 = vmatpush2.bf16.msra.mxu0 %v3598_v0  ;;  %2982 = vmatprep.subr.bf16.mxu1 %v3609_v47  ;;  %v3696_v0 = vld [vmem:[#allocation5 + $0x3ec] ss:$16 sps:$4 sm:$0xff]   ;;  %v3697_v47 = vld [vmem:[#allocation5 + $0x428] ss:$16 sps:$4 sm:$0xff]  }
 0x166   :  { %2945 = vmatprep.subr.bf16.mxu0 %v3606_v50  ;;  %v3694_v50 = vld [vmem:[#allocation5 + $0x3e8] ss:$16 sps:$4 sm:$0xff]  }
 0x168   :  { %2983 = vmatpush1.bf16.msra.mxu1 %v3607_v48  ;;  %v3705_v48 = vld [vmem:[#allocation5 + $0x40c] ss:$16 sps:$4 sm:$0xff]  }
 0x169   :  { %2946 = vmatpush2.bf16.msra.mxu0 %v3604_v52  ;;  %2984 = vmatprep.subr.bf16.mxu1 %v3615_v53  ;;  %v3702_v52 = vld [vmem:[#allocation5 + $0x3cc] ss:$16 sps:$4 sm:$0xff]   ;;  %v3703_v53 = vld [vmem:[#allocation5 + $0x408] ss:$16 sps:$4 sm:$0xff]  }
 0x16a   :  { %2947 = vmatprep.subr.bf16.mxu0 %v3612_v54  ;;  %v3700_v54 = vld [vmem:[#allocation5 + $0x3c8] ss:$16 sps:$4 sm:$0xff]  }
 0x16c   :  { %2985 = vmatpush2.bf16.msra.mxu1 %v3613_v36  ;;  %v3711_v36 = vld [vmem:[#allocation5 + $0x5ec] ss:$16 sps:$4 sm:$0xff]  }
 0x16d   :  { %2948 = vmatpush2.bf16.msra.mxu0 %v3610_v56  ;;  %2986 = vmatprep.subr.bf16.mxu1 %v3621_v60  ;;  %v3708_v56 = vld [vmem:[#allocation5 + $0x3ac] ss:$16 sps:$4 sm:$0xff]   ;;  %v3709_v60 = vld [vmem:[#allocation5 + $0x5e8] ss:$16 sps:$4 sm:$0xff]  }
 0x16e   :  { %2949 = vmatprep.subr.bf16.mxu0 %v3618_v38  ;;  %v3706_v38 = vld [vmem:[#allocation5 + $0x3a8] ss:$16 sps:$4 sm:$0xff]  }
 0x170   :  { %2987 = vmatpush2.bf16.msra.mxu1 %v3619_v61  ;;  %v3717_v61 = vld [vmem:[#allocation5 + $0x5cc] ss:$16 sps:$4 sm:$0xff]  }
 0x171   :  { %2950 = vmatpush2.bf16.msra.mxu0 %v3616_v1  ;;  %2988 = vmatprep.subr.bf16.mxu1 %v3627_v3  ;;  %v3714_v1 = vld [vmem:[#allocation5 + $0x38c] ss:$16 sps:$4 sm:$0xff]   ;;  %v3715_v3 = vld [vmem:[#allocation5 + $0x5c8] ss:$16 sps:$4 sm:$0xff]  }
 0x172   :  { %2951 = vmatprep.subr.bf16.mxu0 %v3624_v12  ;;  %v3712_v12 = vld [vmem:[#allocation5 + $0x388] ss:$16 sps:$4 sm:$0xff]  }
 0x174   :  { %2989 = vmatpush2.bf16.msra.mxu1 %v3625_v6  ;;  %v3723_v6 = vld [vmem:[#allocation5 + $0x5ac] ss:$16 sps:$4 sm:$0xff]  }
 0x175   :  { %2952 = vmatpush2.bf16.msra.mxu0 %v3622_v2  ;;  %2990 = vmatprep.subr.bf16.mxu1 %v3633_v7  ;;  %v3720_v2 = vld [vmem:[#allocation5 + $0x36c] ss:$16 sps:$4 sm:$0xff]   ;;  %v3721_v7 = vld [vmem:[#allocation5 + $0x5a8] ss:$16 sps:$4 sm:$0xff]  }
 0x176   :  { %2953 = vmatprep.subr.bf16.mxu0 %v3630_v51  ;;  %v3718_v51 = vld [vmem:[#allocation5 + $0x368] ss:$16 sps:$4 sm:$0xff]  }
 0x178   :  { %2991 = vmatpush2.bf16.msra.mxu1 %v3631_v9  ;;  %v3729_v9 = vld [vmem:[#allocation5 + $0x58c] ss:$16 sps:$4 sm:$0xff]  }
 0x179   :  { %2954 = vmatpush2.bf16.msra.mxu0 %v3628_v46  ;;  %2992 = vmatprep.subr.bf16.mxu1 %v3639_v55  ;;  %v3726_v46 = vld [vmem:[#allocation5 + $0x34c] ss:$16 sps:$4 sm:$0xff]   ;;  %v3727_v55 = vld [vmem:[#allocation5 + $0x588] ss:$16 sps:$4 sm:$0xff]  }
 0x17a   :  { %2955 = vmatprep.subr.bf16.mxu0 %v3636_v10  ;;  %v3724_v10 = vld [vmem:[#allocation5 + $0x348] ss:$16 sps:$4 sm:$0xff]  }
 0x17c   :  { %2993 = vmatpush2.bf16.msra.mxu1 %v3637_v5  ;;  %v3735_v5 = vld [vmem:[#allocation5 + $0x56c] ss:$16 sps:$4 sm:$0xff]  }
 0x17d   :  { %2956 = vmatpush2.bf16.msra.mxu0 %v3634_v29  ;;  %2994 = vmatprep.subr.bf16.mxu1 %v3645_v17  ;;  %v3732_v29 = vld [vmem:[#allocation5 + $0x32c] ss:$16 sps:$4 sm:$0xff]   ;;  %v3733_v17 = vld [vmem:[#allocation5 + $0x568] ss:$16 sps:$4 sm:$0xff]  }
 0x17e   :  { %2957 = vmatprep.subr.bf16.mxu0 %v3642_v11  ;;  %v3730_v11 = vld [vmem:[#allocation5 + $0x328] ss:$16 sps:$4 sm:$0xff]  }
 0x180   :  { %2995 = vmatpush2.bf16.msra.mxu1 %v3643_v57  ;;  %v3741_v57 = vld [vmem:[#allocation5 + $0x54c] ss:$16 sps:$4 sm:$0xff]  }
 0x181   :  { %2958 = vmatpush2.bf16.msra.mxu0 %v3640_v33  ;;  %2996 = vmatprep.subr.bf16.mxu1 %v3648_v40  ;;  %v3738_v33 = vld [vmem:[#allocation5 + $0x30c] ss:$16 sps:$4 sm:$0xff]   ;;  %v3739_v40 = vld [vmem:[#allocation5 + $0x548] ss:$16 sps:$4 sm:$0xff]  }
 0x182   :  { %3009 = vmatprep.subr.bf16.mxu0 %v3651_v26  ;;  %v3736_v26 = vld [vmem:[#allocation5 + $0x308] ss:$16 sps:$4 sm:$0xff]  }
 0x184   :  { %2960 = vmatmul.mubr.bf16.vlgmr.msra.gmra.mxu0 %v4144_v4  ;;  %2997 = vmatpush2.bf16.msra.mxu1 %v3646_v59  ;;  %v3744_v59 = vld [vmem:[#allocation5 + $0x52c] ss:$16 sps:$4 sm:$0xff]  }
 0x185   :  { %3010 = vmatpush1.bf16.msra.mxu0 %v3649_v63  ;;  %3041 = vmatprep.mubr.bf16.mxu0 %v4133_v16  ;;  %v3664_v16 = vld [vmem:[#allocation5 + $0x288] ss:$16 sps:$4 sm:$0xff]  }
 0x186   :  { %2998 = vmatprep.subr.bf16.mxu1 %v3654_v18  ;;  %3011 = vmatprep.subr.bf16.mxu0 %v3657_v14  ;;  %v3742_v63 = vld [vmem:[#allocation5 + $0x528] ss:$16 sps:$4 sm:$0xff]   ;;  %v3747_v18 = vld [vmem:[#allocation5 + $0x50c] ss:$16 sps:$4 sm:$0xff]  }
 0x187   :  { %v3745_v14 = vld [vmem:[#allocation5 + $0x508] ss:$16 sps:$4 sm:$0xff]  }
 0x188   :  { %2999 = vmatpush2.bf16.msra.mxu1 %v3652_v22 }
 0x189   :  { %3012 = vmatpush1.bf16.msra.mxu0 %v3655_v23  ;;  %3050 = vmatprep.subr.bf16.mxu1 %v3663_v24 }
 0x18a   :  { %3013 = vmatprep.subr.bf16.mxu0 %v3660_v19 }
 0x18b   :  { %3001 = vmatmul.mubr.bf16.vlgmr.msra.gmra.mxu1 %v4109_v62  ;;  %v3679_v62 = vld [vmem:[#allocation5 + $0x488] ss:$16 sps:$4 sm:$0xff]  }
 0x18c   :  { %3051 = vmatpush1.bf16.msra.mxu1 %v3661_v25  ;;  %3082 = vmatprep.mubr.bf16.mxu1 %v4135_v8  ;;  %v3687_v8 = vld [vmem:[#allocation5 + $0x46c] ss:$16 sps:$4 sm:$0xff]  }
 0x18d   :  { %3014 = vmatpush1.bf16.msra.mxu0 %v3658_v27  ;;  %3052 = vmatprep.subr.bf16.mxu1 %v3669_v49 }
 0x18e   :  { %3015 = vmatprep.subr.bf16.mxu0 %v3666_v28 }
 0x190   :  { %3053 = vmatpush1.bf16.msra.mxu1 %v3667_v13  ;;  %v1666_v13 = vlaneseq }
 0x191   :  { %3016 = vmatpush1.bf16.msra.mxu0 %v3664_v16  ;;  %3054 = vmatprep.subr.bf16.mxu1 %v3675_v20 }
 0x192   :  { %3017 = vmatprep.subr.bf16.mxu0 %v3672_v30  ;;  %v1667_v16 = vshrl.u32 %v1666_v13, 7 }
 0x194   :  { %3055 = vmatpush1.bf16.msra.mxu1 %v3673_v34  ;;  %v1668_v20 = vsub.s32 0, %v1667_v16  ;;  %v1672_v30 = vsub.s32 1, %v1667_v16 }
 0x195   :  { %3018 = vmatpush1.bf16.msra.mxu0 %v3670_v58  ;;  %3056 = vmatprep.subr.bf16.mxu1 %v3681_v35 }
 0x196   :  { %3019 = vmatprep.subr.bf16.mxu0 %v3678_v31 }
 0x198   :  { %3057 = vmatpush1.bf16.msra.mxu1 %v3679_v62 }
 0x199   :  { %3020 = vmatpush1.bf16.msra.mxu0 %v3676_v39  ;;  %3058 = vmatprep.subr.bf16.mxu1 %v3687_v8 }
 0x19a   :  { %3021 = vmatprep.subr.bf16.mxu0 %v3684_v37 }
 0x19c   :  { %3059 = vmatpush1.bf16.msra.mxu1 %v3685_v41 }
 0x19d   :  { %3022 = vmatpush1.bf16.msra.mxu0 %v3682_v32  ;;  %3060 = vmatprep.subr.bf16.mxu1 %v3693_v42 }
 0x19e   :  { %3023 = vmatprep.subr.bf16.mxu0 %v3690_v43 }
 0x1a0   :  { %3061 = vmatpush1.bf16.msra.mxu1 %v3691_v44 }
 0x1a1   :  { %3024 = vmatpush1.bf16.msra.mxu0 %v3688_v15  ;;  %3062 = vmatprep.subr.bf16.mxu1 %v3699_v45 }
 0x1a2   :  { %3025 = vmatprep.subr.bf16.mxu0 %v3696_v0 }
 0x1a4   :  { %3063 = vmatpush1.bf16.msra.mxu1 %v3697_v47 }
 0x1a5   :  { %3026 = vmatpush2.bf16.msra.mxu0 %v3694_v50  ;;  %3064 = vmatprep.subr.bf16.mxu1 %v3705_v48  ;;  %v1676_v50 = vsub.s32 2, %v1667_v16  ;;  %v1680_v48 = vsub.s32 3, %v1667_v16 }
 0x1a6   :  { %3027 = vmatprep.subr.bf16.mxu0 %v3702_v52 }
 0x1a8   :  { %3065 = vmatpush1.bf16.msra.mxu1 %v3703_v53 }
 0x1a9   :  { %3028 = vmatpush2.bf16.msra.mxu0 %v3700_v54  ;;  %3066 = vmatprep.subr.bf16.mxu1 %v3711_v36 }
 0x1aa   :  { %3029 = vmatprep.subr.bf16.mxu0 %v3708_v56 }
 0x1ac   :  { %3067 = vmatpush2.bf16.msra.mxu1 %v3709_v60 }
 0x1ad   :  { %3030 = vmatpush2.bf16.msra.mxu0 %v3706_v38  ;;  %3068 = vmatprep.subr.bf16.mxu1 %v3717_v61 }
 0x1ae   :  { %3031 = vmatprep.subr.bf16.mxu0 %v3714_v1 }
 0x1b0   :  { %3069 = vmatpush2.bf16.msra.mxu1 %v3715_v3 }
 0x1b1   :  { %3032 = vmatpush2.bf16.msra.mxu0 %v3712_v12  ;;  %3070 = vmatprep.subr.bf16.mxu1 %v3723_v6 }
 0x1b2   :  { %3033 = vmatprep.subr.bf16.mxu0 %v3720_v2 }
 0x1b4   :  { %3071 = vmatpush2.bf16.msra.mxu1 %v3721_v7 }
 0x1b5   :  { %3034 = vmatpush2.bf16.msra.mxu0 %v3718_v51  ;;  %3072 = vmatprep.subr.bf16.mxu1 %v3729_v9 }
 0x1b6   :  { %3035 = vmatprep.subr.bf16.mxu0 %v3726_v46 }
 0x1b8   :  { %3073 = vmatpush2.bf16.msra.mxu1 %v3727_v55 }
 0x1b9   :  { %3036 = vmatpush2.bf16.msra.mxu0 %v3724_v10  ;;  %3074 = vmatprep.subr.bf16.mxu1 %v3735_v5 }
 0x1ba   :  { %3037 = vmatprep.subr.bf16.mxu0 %v3732_v29 }
 0x1bc   :  { %3075 = vmatpush2.bf16.msra.mxu1 %v3733_v17 }
 0x1bd   :  { %3038 = vmatpush2.bf16.msra.mxu0 %v3730_v11  ;;  %3076 = vmatprep.subr.bf16.mxu1 %v3741_v57 }
 0x1be   :  { %3039 = vmatprep.subr.bf16.mxu0 %v3738_v33 }
 0x1c0   :  { %3077 = vmatpush2.bf16.msra.mxu1 %v3739_v40 }
 0x1c1   :  { %3040 = vmatpush2.bf16.msra.mxu0 %v3736_v26  ;;  %3078 = vmatprep.subr.bf16.mxu1 %v3744_v59 }
 0x1c4   :  { %3042 = vmatmul.mubr.bf16.vlgmr.msra.gmra.mxu0 %v4137_v21  ;;  %3079 = vmatpush2.bf16.msra.mxu1 %v3742_v63  ;;  %v1664_v21 = vld [vmem:[%s4162_s4] sm:$0xf]  ;;  %s3829_s4 = smov [#allocation7]  }
 0x1c5   :  { %3080 = vmatprep.subr.bf16.mxu1 %v3747_v18  ;;  %v1669_v34 = vrot.slane %v1664_v21, %v1668_v20  ;;  %v1673_v58 = vrot.slane %v1664_v21, %v1672_v30  ;;  %v1677_v52 = vrot.slane %v1664_v21, %v1676_v50  ;;  %v1681_v54 = vrot.slane %v1664_v21, %v1680_v48  ;;  %s3105_s23 = sshll.u32 %s3829_s4, 4  ;;  %s3106_s23 = int_to_ptr.vmem [resolvable:$true] %s3105_s23 }
 0x1c6   :  { %s3796_s24 = scalar_lea.vmem %s3106_s23, 512  ;;  %p3801_p11 = scmp.lt.s32.totalorder %s3106_s23, %s3106_s23 }
 0x1c7   :  { %p3797_p10 = scmp.ne.s32.totalorder %s3106_s23, %s3796_s24  ;;  %p3802_p12 = scmp.lt.s32.totalorder %s3796_s24, %s3796_s24 }
 0x1c8   :  { %3081 = vmatpush2.bf16.msra.mxu1 %v3745_v14 }
 0x1c9   :  { %p3803_p13 = por %p3802_p12, %p3801_p11 }
 0x1cb   :  { %3083 = vmatmul.mubr.bf16.vlgmr.msra.gmra.mxu1 %v4144_v4  ;;  %p3804_p0 = pnand %p3803_p13, %p3797_p10 }
 0x204   :  { %v2879_v22 = vpop.f32.mrf.mxu0 }
 0x205   :  { %v2880_v35 = vadd.f32 %v2879_v22, %v1669_v34 }
 0x206   :  { %v2881_v23 = vpop.f32.mrf.mxu0 }
 0x207   :  { %v2882_v4 = vadd.f32 %v2881_v23, %v1673_v58 }
 0x208   :  { %v2883_v24 = vpop.f32.mrf.mxu0 }
 0x20a   :  { %v2884_v19 = vpop.f32.mrf.mxu0 }
 0x20b   :  { %v2920_v25 = vpop.f32.mrf.mxu1 }
 0x20c   :  { %v2921_v31 = vadd.f32 %v2920_v25, %v2880_v35 }
 0x20d   :  { %v2922_v27 = vpop.f32.mrf.mxu1 }
 0x20e   :  { %v2923_v39 = vadd.f32 %v2922_v27, %v2882_v4 }
 0x20f   :  { %v2924_v49 = vpop.f32.mrf.mxu1 }
 0x211   :  { %v2925_v28 = vpop.f32.mrf.mxu1 }
 0x244   :  { %v2961_v62 = vpop.f32.mrf.mxu0 }
 0x245   :  { %v2962_v8 = vadd.f32 %v2961_v62, %v2921_v31 }
 0x246   :  { %v2963_v37 = vpop.f32.mrf.mxu0 }
 0x247   :  { %3748 = vtanh.f32 %v2962_v8  ;;  %v2964_v41 = vadd.f32 %v2963_v37, %v2923_v39 }
 0x248   :  { %v2965_v32 = vpop.f32.mrf.mxu0 }
 0x249   :  { %3750 = vtanh.f32 %v2964_v41 }
 0x24a   :  { %v2966_v42 = vpop.f32.mrf.mxu0 }
 0x24b   :  { %v3002_v43 = vpop.f32.mrf.mxu1 }
 0x24c   :  { %v3003_v56 = vadd.f32 %v3002_v43, %v1677_v52 }
 0x24d   :  { %v3004_v44 = vpop.f32.mrf.mxu1 }
 0x24e   :  { %v3005_v38 = vadd.f32 %v3004_v44, %v1681_v54 }
 0x24f   :  { %v3006_v15 = vpop.f32.mrf.mxu1 }
 0x251   :  { %v3007_v45 = vpop.f32.mrf.mxu1 }
 0x254   :  { %v3749_v0 = vpop.eup %3748 }
 0x255   :  { %3095 = vst [vmem:[#allocation7] sm:$0xff] %v3749_v0 }
 0x256   :  { %v3751_v47 = vpop.eup %3750 }
 0x257   :  { %3096 = vst [vmem:[#allocation7 + $0x8] sm:$0xff] %v3751_v47 }
 0x284   :  { %v3043_v53 = vpop.f32.mrf.mxu0 }
 0x285   :  { %v3044_v61 = vadd.f32 %v3043_v53, %v3003_v56 }
 0x286   :  { %v3045_v36 = vpop.f32.mrf.mxu0 }
 0x287   :  { %v3046_v12 = vadd.f32 %v3045_v36, %v3005_v38 }
 0x288   :  { %v3047_v60 = vpop.f32.mrf.mxu0 }
 0x28a   :  { %v3048_v1 = vpop.f32.mrf.mxu0 }
 0x28b   :  { %v3084_v3 = vpop.f32.mrf.mxu1 }
 0x28c   :  { %v3085_v6 = vadd.f32 %v3084_v3, %v3044_v61 }
 0x28d   :  { %v3086_v2 = vpop.f32.mrf.mxu1 }
 0x28e   :  { %3752 = vtanh.f32 %v3085_v6  ;;  %v3087_v7 = vadd.f32 %v3086_v2, %v3046_v12 }
 0x28f   :  { %v3088_v51 = vpop.f32.mrf.mxu1 }
 0x290   :  { %3754 = vtanh.f32 %v3087_v7 }
 0x291   :  { %v3089_v9 = vpop.f32.mrf.mxu1 }
 0x29b   :  { %v3753_v46 = vpop.eup %3752 }
 0x29c   :  { %3097 = vst [vmem:[#allocation7 + $0x10] sm:$0xff] %v3753_v46 }
 0x29d   :  { %v3755_v55 = vpop.eup %3754 }
 0x29e   :  { %3098 = vst [vmem:[#allocation7 + $0x18] sm:$0xff] %v3755_v55 }
 0x29f   :  { %3807 = shalt.err (!%p3804_p0)
}
 0x2a0   :  { %3108 = dma.vmem_to_hbm [thread:$0]  %s3106_s23, 512, %s4163_s5, [#allocation4]  }
 0x2a1   :  { %3820 = dma.done.wait [#allocation4], 512  }
 0x2a2   :  { %3821 = vsyncadd [#allocation4], 4294966784 }
 0x2a3   :  { %3112 = vsyncpa [#allocation3], 1 }
 0x2a4   :  { %3113 = vsyncpa [#allocation6], 1 }
 0x2a5   :  { %3114 = vsyncpa [#allocation4], 1 }

</bundles_post_ra>
